<compile_context>
chip_gen: v5e
topology: v5e:2x2
jax: 0.10.0
libtpu: 0.0.40
codegen_flags: <defaults>
</compile_context>

<pallas_src>
import math

import jax
import jax.numpy as jnp
from jax import lax
from jax.experimental import pallas as pl
from jax.experimental.pallas import tpu as pltpu

# ----------------------------- model config (tiny, synthetic) -----------------------------
VOCAB = 100
N_POS = 16
E = 32            # n_embd
H = 2             # n_head
HD = E // H       # head dim
N_LAYER = 2
MLP_DIM = 4 * E
NUM_LABELS = 5    # "Dicots_5"
CLS_PAD = 128     # lane-dense classifier output width (sliced back to NUM_LABELS)
LN_EPS = 1e-5
MASK_VALUE = -1e30


# --------------------------------- in-kernel helpers ---------------------------------------
def _layernorm(x, g, b):
    mu = jnp.mean(x, axis=-1, keepdims=True)
    var = jnp.mean((x - mu) ** 2, axis=-1, keepdims=True)
    return (x - mu) * lax.rsqrt(var + LN_EPS) * g + b


def _gelu_new(x):
    c = math.sqrt(2.0 / math.pi)
    return 0.5 * x * (1.0 + jnp.tanh(c * (x + 0.044715 * x * x * x)))


# ------------------------------------ fused kernel -----------------------------------------
def _make_kernel(B, S):
    M = B * S
    scale = 1.0 / math.sqrt(HD)

    def kernel(x_ref, mask_ref,
               ln1_g_ref, ln1_b_ref, w_qkv_ref, b_qkv_ref, w_proj_ref, b_proj_ref,
               ln2_g_ref, ln2_b_ref, w_fc_ref, b_fc_ref, w_out_ref, b_out_ref,
               lnf_g_ref, lnf_b_ref, cls_w_ref, cls_b_ref,
               o_ref, x_state):
        l = pl.program_id(0)

        # Grid step 0: load the (token+pos) embeddings into the resident residual stream.
        @pl.when(l == 0)
        def _():
            x_state[...] = x_ref[...]

        x = x_state[...]                                          # (M, E) f32, VMEM-resident

        # Combined causal + key-padding mask, (B, S, S) bool (single select per head).
        row = lax.broadcasted_iota(jnp.int32, (S, S), 0)
        col = lax.broadcasted_iota(jnp.int32, (S, S), 1)
        causal = row >= col
        keep = jnp.logical_and(causal[None, :, :], mask_ref[...][:, None, :] > 0.5)

        # ------------------------------- attention block -------------------------------
        h = _layernorm(x, ln1_g_ref[...], ln1_b_ref[...])
        qkv = (jnp.dot(h.astype(jnp.bfloat16), w_qkv_ref[...],
                       preferred_element_type=jnp.float32)
               + b_qkv_ref[...])                                  # (M, 3E) f32
        qkv3 = qkv.reshape(B, S, 3 * E)

        head_out = []
        for hd in range(H):                                       # tiny static head loop
            c0 = hd * HD
            q = qkv3[:, :, c0:c0 + HD].astype(jnp.bfloat16)               # (B, S, HD)
            k = qkv3[:, :, E + c0:E + c0 + HD].astype(jnp.bfloat16)
            v = qkv3[:, :, 2 * E + c0:2 * E + c0 + HD].astype(jnp.bfloat16)
            # batched over B: no per-batch tiny dots, no k.T transpose
            s = jnp.einsum('bqd,bkd->bqk', q, k,
                           preferred_element_type=jnp.float32) * scale   # (B, S, S) f32
            s = jnp.where(keep, s, MASK_VALUE)
            s = s - jnp.max(s, axis=-1, keepdims=True)
            p = jnp.exp(s)
            p = p * pl.reciprocal(jnp.sum(p, axis=-1, keepdims=True), approx=True)
            head_out.append(jnp.einsum('bqk,bkd->bqd', p.astype(jnp.bfloat16), v,
                                       preferred_element_type=jnp.float32))
        # head outputs stay in registers; no VMEM scratch round-trip
        attn = jnp.concatenate(head_out, axis=-1).reshape(M, E)

        # fused proj + residual
        x = x + (jnp.dot(attn.astype(jnp.bfloat16), w_proj_ref[...],
                         preferred_element_type=jnp.float32) + b_proj_ref[...])

        # ---------------------------------- MLP block ----------------------------------
        h = _layernorm(x, ln2_g_ref[...], ln2_b_ref[...])
        h = _gelu_new(jnp.dot(h.astype(jnp.bfloat16), w_fc_ref[...],
                              preferred_element_type=jnp.float32) + b_fc_ref[...])
        x = x + (jnp.dot(h.astype(jnp.bfloat16), w_out_ref[...],
                         preferred_element_type=jnp.float32) + b_out_ref[...])

        x_state[...] = x

        # Last layer: ln_f + unmasked mean-pool + classifier, one lane-dense store.
        @pl.when(l == pl.num_programs(0) - 1)
        def _():
            xf = _layernorm(x, lnf_g_ref[...], lnf_b_ref[...])
            pooled = jnp.concatenate(
                [jnp.sum(xf[b * S:(b + 1) * S, :], axis=0, keepdims=True)
                 for b in range(B)], axis=0) * jnp.float32(1.0 / S)       # (B, E) f32
            o_ref[...] = (jnp.dot(pooled.astype(jnp.bfloat16), cls_w_ref[...],
                                  preferred_element_type=jnp.float32)
                          + cls_b_ref[...])                               # (B, CLS_PAD)

    return kernel


# ----------------------------------- parameter init ---------------------------------------
def init_params(key):
    ks = iter(jax.random.split(key, 32))
    std = 0.02

    def nrm(shape):
        return std * jax.random.normal(next(ks), shape, dtype=jnp.float32)

    params = {
        "wte": nrm((VOCAB, E)),
        "wpe": nrm((N_POS, E)),
        "lnf_g": jnp.ones((1, E), jnp.float32),
        "lnf_b": jnp.zeros((1, E), jnp.float32),
        # per-layer weights stacked along a leading layer axis (streamed via BlockSpec)
        "ln1_g": jnp.ones((N_LAYER, 1, E), jnp.float32),
        "ln1_b": jnp.zeros((N_LAYER, 1, E), jnp.float32),
        "ln2_g": jnp.ones((N_LAYER, 1, E), jnp.float32),
        "ln2_b": jnp.zeros((N_LAYER, 1, E), jnp.float32),
        "w_qkv": nrm((N_LAYER, E, 3 * E)),
        "b_qkv": jnp.zeros((N_LAYER, 1, 3 * E), jnp.float32),
        "w_proj": nrm((N_LAYER, E, E)),
        "b_proj": jnp.zeros((N_LAYER, 1, E), jnp.float32),
        "w_fc": nrm((N_LAYER, E, MLP_DIM)),
        "b_fc": jnp.zeros((N_LAYER, 1, MLP_DIM), jnp.float32),
        "w_out": nrm((N_LAYER, MLP_DIM, E)),
        "b_out": jnp.zeros((N_LAYER, 1, E), jnp.float32),
    }
    # classifier: kaiming_uniform_(weight, nonlinearity='relu') -> bound = sqrt(6 / fan_in)
    bound_w = math.sqrt(6.0 / E)
    cls_w = jax.random.uniform(next(ks), (E, NUM_LABELS), jnp.float32,
                               minval=-bound_w, maxval=bound_w)
    bound_b = 1.0 / math.sqrt(E)  # torch Linear default bias init
    cls_b = jax.random.uniform(next(ks), (1, NUM_LABELS), jnp.float32,
                               minval=-bound_b, maxval=bound_b)
    # lane-dense layout: zero-pad the head to 128 output lanes (sliced back in the wrapper)
    params["cls_w_pad"] = jnp.zeros((E, CLS_PAD), jnp.float32).at[:, :NUM_LABELS].set(cls_w)
    params["cls_b_pad"] = jnp.zeros((1, CLS_PAD), jnp.float32).at[:, :NUM_LABELS].set(cls_b)
    return params


# ------------------------------------ full forward ----------------------------------------
def protgpt2_classifier_forward(params, input_ids, attention_mask):
    B, S = input_ids.shape
    M = B * S

    # TODO(synk): pretrained 'nferruz/ProtGPT2' weight loading is not reproducible here;
    # synthetic tiny-GPT2 params are used.  Embedding gather stays as plain-JAX glue.
    x = params["wte"][input_ids] + params["wpe"][jnp.arange(S)][None, :, :]
    x = x.astype(jnp.float32).reshape(M, E)
    mask_f = attention_mask.astype(jnp.float32)

    bf = jnp.bfloat16
    operands = (
        x, mask_f,
        params["ln1_g"], params["ln1_b"],
        params["w_qkv"].astype(bf), params["b_qkv"],
        params["w_proj"].astype(bf), params["b_proj"],
        params["ln2_g"], params["ln2_b"],
        params["w_fc"].astype(bf), params["b_fc"],
        params["w_out"].astype(bf), params["b_out"],
        params["lnf_g"], params["lnf_b"],
        params["cls_w_pad"].astype(bf), params["cls_b_pad"],
    )

    res = lambda l: (0, 0)            # resident: same block every layer step
    stream = lambda l: (l, 0, 0)      # per-layer slice, double-buffered by Pallas

    in_specs = [
        pl.BlockSpec((M, E), res),                      # embeddings
        pl.BlockSpec((B, S), res),                      # attention mask
        pl.BlockSpec((None, 1, E), stream),             # ln1_g
        pl.BlockSpec((None, 1, E), stream),             # ln1_b
        pl.BlockSpec((None, E, 3 * E), stream),         # w_qkv (bf16)
        pl.BlockSpec((None, 1, 3 * E), stream),         # b_qkv
        pl.BlockSpec((None, E, E), stream),             # w_proj (bf16)
        pl.BlockSpec((None, 1, E), stream),             # b_proj
        pl.BlockSpec((None, 1, E), stream),             # ln2_g
        pl.BlockSpec((None, 1, E), stream),             # ln2_b
        pl.BlockSpec((None, E, MLP_DIM), stream),       # w_fc (bf16)
        pl.BlockSpec((None, 1, MLP_DIM), stream),       # b_fc
        pl.BlockSpec((None, MLP_DIM, E), stream),       # w_out (bf16)
        pl.BlockSpec((None, 1, E), stream),             # b_out
        pl.BlockSpec((1, E), res),                      # lnf_g
        pl.BlockSpec((1, E), res),                      # lnf_b
        pl.BlockSpec((E, CLS_PAD), res),                # classifier weight (bf16, padded)
        pl.BlockSpec((1, CLS_PAD), res),                # classifier bias (padded)
    ]
    out_spec = pl.BlockSpec((B, CLS_PAD), res)

    # rough advisory cost estimate for the fused kernel
    flops_layer = (2 * M * E * (3 * E)                      # qkv
                   + B * H * (2 * S * S * HD) * 2           # scores + p@v
                   + 2 * M * E * E                          # proj
                   + 2 * M * E * MLP_DIM                    # fc
                   + 2 * M * MLP_DIM * E)                   # out
    cost = pl.CostEstimate(
        flops=N_LAYER * flops_layer + 2 * B * E * CLS_PAD,
        transcendentals=N_LAYER * (M * MLP_DIM + B * H * S * S) + (2 * N_LAYER + 1) * M,
        bytes_accessed=sum(int(a.size) * int(a.dtype.itemsize) for a in operands)
                       + B * CLS_PAD * 4,
    )

    kernel = _make_kernel(B, S)
    logits_padded = pl.pallas_call(
        kernel,
        out_shape=jax.ShapeDtypeStruct((B, CLS_PAD), jnp.float32),
        grid_spec=pltpu.PrefetchScalarGridSpec(
            num_scalar_prefetch=0,
            grid=(N_LAYER,),
            in_specs=in_specs,
            out_specs=out_spec,
            scratch_shapes=[pltpu.VMEM((M, E), jnp.float32)],  # resident residual stream
        ),
        compiler_params=pltpu.CompilerParams(
            # layer axis is a sequential carry.
            # TODO(synk): add a 'parallel' batch/query-tile grid axis for v7x's 2 TCs
            # once B*S is large enough to split (weights would then re-stream per tile).
            dimension_semantics=("arbitrary",),
            # ~48 MiB: leaves room to double-buffer real per-layer bf16 weights on v7x (64 MiB).
            vmem_limit_bytes=48 * 1024 * 1024,
        ),
        cost_estimate=cost,
    )(*operands)

    return logits_padded[:, :NUM_LABELS]


# ---------------------------------------- main --------------------------------------------
if __name__ == "__main__":
    key = jax.random.PRNGKey(0)
    k_par, k_ids = jax.random.split(key)

    B, S = 2, 8
    params = init_params(k_par)
    input_ids = jax.random.randint(k_ids, (B, S), 0, VOCAB, dtype=jnp.int32)
    attention_mask = jnp.array(
        [[1, 1, 1, 1, 1, 1, 1, 1],
         [1, 1, 1, 1, 1, 1, 0, 0]], dtype=jnp.int32
    )

    logits = protgpt2_classifier_forward(params, input_ids, attention_mask)
    logits = jax.block_until_ready(logits)
    assert logits.shape == (B, NUM_LABELS) and logits.dtype == jnp.float32
    assert bool(jnp.all(jnp.isfinite(logits)))
    print("KERNEL_OK")
</pallas_src>

<mosaic_0001>
module attributes {stable_mosaic.version = 11 : i64} {
  func.func @kernel(%arg0: i32, %arg1: memref<16x32xf32, #tpu.memory_space<vmem>>, %arg2: memref<2x8xf32, #tpu.memory_space<vmem>>, %arg3: memref<1x1x32xf32, #tpu.memory_space<vmem>>, %arg4: memref<1x1x32xf32, #tpu.memory_space<vmem>>, %arg5: memref<1x32x96xbf16, #tpu.memory_space<vmem>>, %arg6: memref<1x1x96xf32, #tpu.memory_space<vmem>>, %arg7: memref<1x32x32xbf16, #tpu.memory_space<vmem>>, %arg8: memref<1x1x32xf32, #tpu.memory_space<vmem>>, %arg9: memref<1x1x32xf32, #tpu.memory_space<vmem>>, %arg10: memref<1x1x32xf32, #tpu.memory_space<vmem>>, %arg11: memref<1x32x128xbf16, #tpu.memory_space<vmem>>, %arg12: memref<1x1x128xf32, #tpu.memory_space<vmem>>, %arg13: memref<1x128x32xbf16, #tpu.memory_space<vmem>>, %arg14: memref<1x1x32xf32, #tpu.memory_space<vmem>>, %arg15: memref<1x32xf32, #tpu.memory_space<vmem>>, %arg16: memref<1x32xf32, #tpu.memory_space<vmem>>, %arg17: memref<32x128xbf16, #tpu.memory_space<vmem>>, %arg18: memref<1x128xf32, #tpu.memory_space<vmem>>, %arg19: memref<2x128xf32, #tpu.memory_space<vmem>>, %arg20: memref<16x32xf32, #tpu.memory_space<vmem>>) attributes {dimension_semantics = [#tpu.dimension_semantics<arbitrary>], iteration_bounds = array<i64: 2>, scalar_prefetch = 0 : i64, scratch_operands = 1 : i64, tpu.core_type = #tpu.core_type<tc>, window_params = [{pipeline_mode = #tpu.pipeline_mode<synchronous>, transform_indices = @transform_0, window_bounds = array<i64: 16, 32>}, {pipeline_mode = #tpu.pipeline_mode<synchronous>, transform_indices = @transform_1, window_bounds = array<i64: 2, 8>}, {transform_indices = @transform_2, window_bounds = array<i64: 1, 1, 32>}, {transform_indices = @transform_3, window_bounds = array<i64: 1, 1, 32>}, {transform_indices = @transform_4, window_bounds = array<i64: 1, 32, 96>}, {transform_indices = @transform_5, window_bounds = array<i64: 1, 1, 96>}, {transform_indices = @transform_6, window_bounds = array<i64: 1, 32, 32>}, {transform_indices = @transform_7, window_bounds = array<i64: 1, 1, 32>}, {transform_indices = @transform_8, window_bounds = array<i64: 1, 1, 32>}, {transform_indices = @transform_9, window_bounds = array<i64: 1, 1, 32>}, {transform_indices = @transform_10, window_bounds = array<i64: 1, 32, 128>}, {transform_indices = @transform_11, window_bounds = array<i64: 1, 1, 128>}, {transform_indices = @transform_12, window_bounds = array<i64: 1, 128, 32>}, {transform_indices = @transform_13, window_bounds = array<i64: 1, 1, 32>}, {pipeline_mode = #tpu.pipeline_mode<synchronous>, transform_indices = @transform_14, window_bounds = array<i64: 1, 32>}, {pipeline_mode = #tpu.pipeline_mode<synchronous>, transform_indices = @transform_15, window_bounds = array<i64: 1, 32>}, {pipeline_mode = #tpu.pipeline_mode<synchronous>, transform_indices = @transform_16, window_bounds = array<i64: 32, 128>}, {pipeline_mode = #tpu.pipeline_mode<synchronous>, transform_indices = @transform_17, window_bounds = array<i64: 1, 128>}, {pipeline_mode = #tpu.pipeline_mode<synchronous>, transform_indices = @transform_18, window_bounds = array<i64: 2, 128>}]} {
    %c0_i32 = arith.constant 0 : i32
    %0 = arith.cmpi eq, %arg0, %c0_i32 : i32
    %1 = arith.extui %0 : i1 to i32
    %c0_i32_0 = arith.constant 0 : i32
    %2 = arith.cmpi ne, %1, %c0_i32_0 : i32
    scf.if %2 {
      %c0_73 = arith.constant 0 : index
      %c0_74 = arith.constant 0 : index
      %167 = vector.load %arg1[%c0_73, %c0_74] : memref<16x32xf32, #tpu.memory_space<vmem>>, vector<16x32xf32>
      %c0_75 = arith.constant 0 : index
      %c0_76 = arith.constant 0 : index
      %168 = vector.load %arg20[%c0_75, %c0_76] : memref<16x32xf32, #tpu.memory_space<vmem>>, vector<16x32xf32>
      tpu.vector_store %arg20[%c0_75, %c0_76], %167 {strides = array<i32>} : memref<16x32xf32, #tpu.memory_space<vmem>>, vector<16x32xf32>,
    } else {
    }
    %c0 = arith.constant 0 : index
    %c0_1 = arith.constant 0 : index
    %3 = vector.load %arg20[%c0, %c0_1] : memref<16x32xf32, #tpu.memory_space<vmem>>, vector<16x32xf32>
    %4 = tpu.iota {dimensions = array<i32: 0>} : vector<8x8xi32>
    %5 = tpu.iota {dimensions = array<i32: 1>} : vector<8x8xi32>
    %6 = arith.cmpi sge, %4, %5 : vector<8x8xi32>
    %7 = vector.shape_cast %6 : vector<8x8xi1> to vector<1x8x8xi1>
    %c0_2 = arith.constant 0 : index
    %c0_3 = arith.constant 0 : index
    %8 = vector.load %arg2[%c0_2, %c0_3] : memref<2x8xf32, #tpu.memory_space<vmem>>, vector<2x8xf32>
    %9 = vector.shape_cast %8 : vector<2x8xf32> to vector<2x1x8xf32>
    %cst = arith.constant 5.000000e-01 : f32
    %10 = vector.broadcast %cst : f32 to vector<2x1x8xf32>
    %11 = arith.cmpf ogt, %9, %10 : vector<2x1x8xf32>
    %12 = vector.broadcast %7 : vector<1x8x8xi1> to vector<2x8x8xi1>
    %13 = vector.broadcast %11 : vector<2x1x8xi1> to vector<2x8x8xi1>
    %14 = arith.andi %12, %13 : vector<2x8x8xi1>
    %c0_4 = arith.constant 0 : index
    %c0_5 = arith.constant 0 : index
    %c0_6 = arith.constant 0 : index
    %15 = vector.load %arg3[%c0_4, %c0_5, %c0_6] : memref<1x1x32xf32, #tpu.memory_space<vmem>>, vector<1x1x32xf32>
    %16 = vector.shape_cast %15 : vector<1x1x32xf32> to vector<1x32xf32>
    %c0_7 = arith.constant 0 : index
    %c0_8 = arith.constant 0 : index
    %c0_9 = arith.constant 0 : index
    %17 = vector.load %arg4[%c0_7, %c0_8, %c0_9] : memref<1x1x32xf32, #tpu.memory_space<vmem>>, vector<1x1x32xf32>
    %18 = vector.shape_cast %17 : vector<1x1x32xf32> to vector<1x32xf32>
    %cst_10 = arith.constant dense<0.000000e+00> : vector<16xf32>
    %19 = vector.multi_reduction <add>, %3, %cst_10 [1] : vector<16x32xf32> to vector<16xf32>
    %20 = vector.shape_cast %19 : vector<16xf32> to vector<16x1xf32>
    %cst_11 = arith.constant 3.200000e+01 : f32
    %21 = vector.broadcast %cst_11 : f32 to vector<16x1xf32>
    %22 = arith.divf %20, %21 : vector<16x1xf32>
    %23 = vector.broadcast %22 : vector<16x1xf32> to vector<16x32xf32>
    %24 = arith.subf %3, %23 : vector<16x32xf32>
    %25 = arith.mulf %24, %24 : vector<16x32xf32>
    %cst_12 = arith.constant dense<0.000000e+00> : vector<16xf32>
    %26 = vector.multi_reduction <add>, %25, %cst_12 [1] : vector<16x32xf32> to vector<16xf32>
    %27 = vector.shape_cast %26 : vector<16xf32> to vector<16x1xf32>
    %cst_13 = arith.constant 3.200000e+01 : f32
    %28 = vector.broadcast %cst_13 : f32 to vector<16x1xf32>
    %29 = arith.divf %27, %28 : vector<16x1xf32>
    %30 = vector.broadcast %22 : vector<16x1xf32> to vector<16x32xf32>
    %31 = arith.subf %3, %30 : vector<16x32xf32>
    %cst_14 = arith.constant 9.99999974E-6 : f32
    %32 = vector.broadcast %cst_14 : f32 to vector<16x1xf32>
    %33 = arith.addf %29, %32 : vector<16x1xf32>
    %34 = math.rsqrt %33 : vector<16x1xf32>
    %35 = vector.broadcast %34 : vector<16x1xf32> to vector<16x32xf32>
    %36 = arith.mulf %31, %35 : vector<16x32xf32>
    %37 = vector.broadcast %16 : vector<1x32xf32> to vector<16x32xf32>
    %38 = arith.mulf %36, %37 : vector<16x32xf32>
    %39 = vector.broadcast %18 : vector<1x32xf32> to vector<16x32xf32>
    %40 = arith.addf %38, %39 : vector<16x32xf32>
    %41 = arith.truncf %40 : vector<16x32xf32> to vector<16x32xbf16>
    %c0_15 = arith.constant 0 : index
    %c0_16 = arith.constant 0 : index
    %c0_17 = arith.constant 0 : index
    %42 = vector.load %arg5[%c0_15, %c0_16, %c0_17] : memref<1x32x96xbf16, #tpu.memory_space<vmem>>, vector<1x32x96xbf16>
    %43 = vector.shape_cast %42 : vector<1x32x96xbf16> to vector<32x96xbf16>
    %cst_18 = arith.constant dense<0.000000e+00> : vector<16x96xf32>
    %44 = tpu.matmul %41, %43, %cst_18 {dimension_numbers = #tpu.dot_dimension_numbers<[1], [0], [0], [1], [0, 0, 1, 1], [], []>} : vector<16x32xbf16>, vector<32x96xbf16>, vector<16x96xf32> -> vector<16x96xf32>
    %c0_19 = arith.constant 0 : index
    %c0_20 = arith.constant 0 : index
    %c0_21 = arith.constant 0 : index
    %45 = vector.load %arg6[%c0_19, %c0_20, %c0_21] : memref<1x1x96xf32, #tpu.memory_space<vmem>>, vector<1x1x96xf32>
    %46 = vector.shape_cast %45 : vector<1x1x96xf32> to vector<1x96xf32>
    %47 = vector.broadcast %46 : vector<1x96xf32> to vector<16x96xf32>
    %48 = arith.addf %44, %47 : vector<16x96xf32>
    %49 = vector.shape_cast %48 : vector<16x96xf32> to vector<2x8x96xf32>
    %50 = vector.extract_strided_slice %49 {offsets = [0, 0, 0], sizes = [2, 8, 16], strides = [1, 1, 1]} : vector<2x8x96xf32> to vector<2x8x16xf32>
    %51 = arith.truncf %50 : vector<2x8x16xf32> to vector<2x8x16xbf16>
    %52 = vector.extract_strided_slice %49 {offsets = [0, 0, 32], sizes = [2, 8, 16], strides = [1, 1, 1]} : vector<2x8x96xf32> to vector<2x8x16xf32>
    %53 = arith.truncf %52 : vector<2x8x16xf32> to vector<2x8x16xbf16>
    %54 = vector.extract_strided_slice %49 {offsets = [0, 0, 64], sizes = [2, 8, 16], strides = [1, 1, 1]} : vector<2x8x96xf32> to vector<2x8x16xf32>
    %55 = arith.truncf %54 : vector<2x8x16xf32> to vector<2x8x16xbf16>
    "tpu.trace_start"() <{level = 10 : i32, message = "bqd,bkd->bqk"}> : () -> ()
    %cst_22 = arith.constant dense<0.000000e+00> : vector<2x8x8xf32>
    %56 = tpu.matmul %51, %53, %cst_22 {dimension_numbers = #tpu.dot_dimension_numbers<[2], [2], [1], [1], [0, 0, 0, 1, 1, 1], [0], [0]>} : vector<2x8x16xbf16>, vector<2x8x16xbf16>, vector<2x8x8xf32> -> vector<2x8x8xf32>
    "tpu.trace_stop"() : () -> ()
    %cst_23 = arith.constant 2.500000e-01 : f32
    %57 = vector.broadcast %cst_23 : f32 to vector<2x8x8xf32>
    %58 = arith.mulf %56, %57 : vector<2x8x8xf32>
    %cst_24 = arith.constant -1.000000e+30 : f32
    %59 = vector.broadcast %cst_24 : f32 to vector<2x8x8xf32>
    %60 = arith.select %14, %58, %59 : vector<2x8x8xi1>, vector<2x8x8xf32>
    %cst_25 = arith.constant dense<0xFF800000> : vector<2x8xf32>
    %61 = vector.multi_reduction <maximumf>, %60, %cst_25 [2] : vector<2x8x8xf32> to vector<2x8xf32>
    %62 = vector.shape_cast %61 : vector<2x8xf32> to vector<2x8x1xf32>
    %63 = vector.broadcast %62 : vector<2x8x1xf32> to vector<2x8x8xf32>
    %64 = arith.subf %60, %63 : vector<2x8x8xf32>
    %65 = math.exp %64 : vector<2x8x8xf32>
    %cst_26 = arith.constant dense<0.000000e+00> : vector<2x8xf32>
    %66 = vector.multi_reduction <add>, %65, %cst_26 [2] : vector<2x8x8xf32> to vector<2x8xf32>
    %67 = vector.shape_cast %66 : vector<2x8xf32> to vector<2x8x1xf32>
    %68 = tpu.reciprocal %67 {approx = true} : vector<2x8x1xf32> -> vector<2x8x1xf32>
    %69 = vector.broadcast %68 : vector<2x8x1xf32> to vector<2x8x8xf32>
    %70 = arith.mulf %65, %69 : vector<2x8x8xf32>
    %71 = arith.truncf %70 : vector<2x8x8xf32> to vector<2x8x8xbf16>
    "tpu.trace_start"() <{level = 10 : i32, message = "bqk,bkd->bqd"}> : () -> ()
    %cst_27 = arith.constant dense<0.000000e+00> : vector<2x8x16xf32>
    %72 = tpu.matmul %71, %55, %cst_27 {dimension_numbers = #tpu.dot_dimension_numbers<[2], [1], [1], [2], [0, 0, 0, 1, 1, 2], [0], [0]>} : vector<2x8x8xbf16>, vector<2x8x16xbf16>, vector<2x8x16xf32> -> vector<2x8x16xf32>
    "tpu.trace_stop"() : () -> ()
    %73 = vector.extract_strided_slice %49 {offsets = [0, 0, 16], sizes = [2, 8, 16], strides = [1, 1, 1]} : vector<2x8x96xf32> to vector<2x8x16xf32>
    %74 = arith.truncf %73 : vector<2x8x16xf32> to vector<2x8x16xbf16>
    %75 = vector.extract_strided_slice %49 {offsets = [0, 0, 48], sizes = [2, 8, 16], strides = [1, 1, 1]} : vector<2x8x96xf32> to vector<2x8x16xf32>
    %76 = arith.truncf %75 : vector<2x8x16xf32> to vector<2x8x16xbf16>
    %77 = vector.extract_strided_slice %49 {offsets = [0, 0, 80], sizes = [2, 8, 16], strides = [1, 1, 1]} : vector<2x8x96xf32> to vector<2x8x16xf32>
    %78 = arith.truncf %77 : vector<2x8x16xf32> to vector<2x8x16xbf16>
    "tpu.trace_start"() <{level = 10 : i32, message = "bqd,bkd->bqk"}> : () -> ()
    %cst_28 = arith.constant dense<0.000000e+00> : vector<2x8x8xf32>
    %79 = tpu.matmul %74, %76, %cst_28 {dimension_numbers = #tpu.dot_dimension_numbers<[2], [2], [1], [1], [0, 0, 0, 1, 1, 1], [0], [0]>} : vector<2x8x16xbf16>, vector<2x8x16xbf16>, vector<2x8x8xf32> -> vector<2x8x8xf32>
    "tpu.trace_stop"() : () -> ()
    %cst_29 = arith.constant 2.500000e-01 : f32
    %80 = vector.broadcast %cst_29 : f32 to vector<2x8x8xf32>
    %81 = arith.mulf %79, %80 : vector<2x8x8xf32>
    %cst_30 = arith.constant -1.000000e+30 : f32
    %82 = vector.broadcast %cst_30 : f32 to vector<2x8x8xf32>
    %83 = arith.select %14, %81, %82 : vector<2x8x8xi1>, vector<2x8x8xf32>
    %cst_31 = arith.constant dense<0xFF800000> : vector<2x8xf32>
    %84 = vector.multi_reduction <maximumf>, %83, %cst_31 [2] : vector<2x8x8xf32> to vector<2x8xf32>
    %85 = vector.shape_cast %84 : vector<2x8xf32> to vector<2x8x1xf32>
    %86 = vector.broadcast %85 : vector<2x8x1xf32> to vector<2x8x8xf32>
    %87 = arith.subf %83, %86 : vector<2x8x8xf32>
    %88 = math.exp %87 : vector<2x8x8xf32>
    %cst_32 = arith.constant dense<0.000000e+00> : vector<2x8xf32>
    %89 = vector.multi_reduction <add>, %88, %cst_32 [2] : vector<2x8x8xf32> to vector<2x8xf32>
    %90 = vector.shape_cast %89 : vector<2x8xf32> to vector<2x8x1xf32>
    %91 = tpu.reciprocal %90 {approx = true} : vector<2x8x1xf32> -> vector<2x8x1xf32>
    %92 = vector.broadcast %91 : vector<2x8x1xf32> to vector<2x8x8xf32>
    %93 = arith.mulf %88, %92 : vector<2x8x8xf32>
    %94 = arith.truncf %93 : vector<2x8x8xf32> to vector<2x8x8xbf16>
    "tpu.trace_start"() <{level = 10 : i32, message = "bqk,bkd->bqd"}> : () -> ()
    %cst_33 = arith.constant dense<0.000000e+00> : vector<2x8x16xf32>
    %95 = tpu.matmul %94, %78, %cst_33 {dimension_numbers = #tpu.dot_dimension_numbers<[2], [1], [1], [2], [0, 0, 0, 1, 1, 2], [0], [0]>} : vector<2x8x8xbf16>, vector<2x8x16xbf16>, vector<2x8x16xf32> -> vector<2x8x16xf32>
    "tpu.trace_stop"() : () -> ()
    %96 = tpu.concatenate %72, %95 in 2 : vector<2x8x16xf32>, vector<2x8x16xf32> -> vector<2x8x32xf32>
    %97 = vector.shape_cast %96 : vector<2x8x32xf32> to vector<16x32xf32>
    %98 = arith.truncf %97 : vector<16x32xf32> to vector<16x32xbf16>
    %c0_34 = arith.constant 0 : index
    %c0_35 = arith.constant 0 : index
    %c0_36 = arith.constant 0 : index
    %99 = vector.load %arg7[%c0_34, %c0_35, %c0_36] : memref<1x32x32xbf16, #tpu.memory_space<vmem>>, vector<1x32x32xbf16>
    %100 = vector.shape_cast %99 : vector<1x32x32xbf16> to vector<32x32xbf16>
    %cst_37 = arith.constant dense<0.000000e+00> : vector<16x32xf32>
    %101 = tpu.matmul %98, %100, %cst_37 {dimension_numbers = #tpu.dot_dimension_numbers<[1], [0], [0], [1], [0, 0, 1, 1], [], []>} : vector<16x32xbf16>, vector<32x32xbf16>, vector<16x32xf32> -> vector<16x32xf32>
    %c0_38 = arith.constant 0 : index
    %c0_39 = arith.constant 0 : index
    %c0_40 = arith.constant 0 : index
    %102 = vector.load %arg8[%c0_38, %c0_39, %c0_40] : memref<1x1x32xf32, #tpu.memory_space<vmem>>, vector<1x1x32xf32>
    %103 = vector.shape_cast %102 : vector<1x1x32xf32> to vector<1x32xf32>
    %104 = vector.broadcast %103 : vector<1x32xf32> to vector<16x32xf32>
    %105 = arith.addf %101, %104 : vector<16x32xf32>
    %106 = arith.addf %3, %105 : vector<16x32xf32>
    %c0_41 = arith.constant 0 : index
    %c0_42 = arith.constant 0 : index
    %c0_43 = arith.constant 0 : index
    %107 = vector.load %arg9[%c0_41, %c0_42, %c0_43] : memref<1x1x32xf32, #tpu.memory_space<vmem>>, vector<1x1x32xf32>
    %108 = vector.shape_cast %107 : vector<1x1x32xf32> to vector<1x32xf32>
    %c0_44 = arith.constant 0 : index
    %c0_45 = arith.constant 0 : index
    %c0_46 = arith.constant 0 : index
    %109 = vector.load %arg10[%c0_44, %c0_45, %c0_46] : memref<1x1x32xf32, #tpu.memory_space<vmem>>, vector<1x1x32xf32>
    %110 = vector.shape_cast %109 : vector<1x1x32xf32> to vector<1x32xf32>
    %cst_47 = arith.constant dense<0.000000e+00> : vector<16xf32>
    %111 = vector.multi_reduction <add>, %106, %cst_47 [1] : vector<16x32xf32> to vector<16xf32>
    %112 = vector.shape_cast %111 : vector<16xf32> to vector<16x1xf32>
    %cst_48 = arith.constant 3.200000e+01 : f32
    %113 = vector.broadcast %cst_48 : f32 to vector<16x1xf32>
    %114 = arith.divf %112, %113 : vector<16x1xf32>
    %115 = vector.broadcast %114 : vector<16x1xf32> to vector<16x32xf32>
    %116 = arith.subf %106, %115 : vector<16x32xf32>
    %117 = arith.mulf %116, %116 : vector<16x32xf32>
    %cst_49 = arith.constant dense<0.000000e+00> : vector<16xf32>
    %118 = vector.multi_reduction <add>, %117, %cst_49 [1] : vector<16x32xf32> to vector<16xf32>
    %119 = vector.shape_cast %118 : vector<16xf32> to vector<16x1xf32>
    %cst_50 = arith.constant 3.200000e+01 : f32
    %120 = vector.broadcast %cst_50 : f32 to vector<16x1xf32>
    %121 = arith.divf %119, %120 : vector<16x1xf32>
    %122 = vector.broadcast %114 : vector<16x1xf32> to vector<16x32xf32>
    %123 = arith.subf %106, %122 : vector<16x32xf32>
    %cst_51 = arith.constant 9.99999974E-6 : f32
    %124 = vector.broadcast %cst_51 : f32 to vector<16x1xf32>
    %125 = arith.addf %121, %124 : vector<16x1xf32>
    %126 = math.rsqrt %125 : vector<16x1xf32>
    %127 = vector.broadcast %126 : vector<16x1xf32> to vector<16x32xf32>
    %128 = arith.mulf %123, %127 : vector<16x32xf32>
    %129 = vector.broadcast %108 : vector<1x32xf32> to vector<16x32xf32>
    %130 = arith.mulf %128, %129 : vector<16x32xf32>
    %131 = vector.broadcast %110 : vector<1x32xf32> to vector<16x32xf32>
    %132 = arith.addf %130, %131 : vector<16x32xf32>
    %133 = arith.truncf %132 : vector<16x32xf32> to vector<16x32xbf16>
    %c0_52 = arith.constant 0 : index
    %c0_53 = arith.constant 0 : index
    %c0_54 = arith.constant 0 : index
    %134 = vector.load %arg11[%c0_52, %c0_53, %c0_54] : memref<1x32x128xbf16, #tpu.memory_space<vmem>>, vector<1x32x128xbf16>
    %135 = vector.shape_cast %134 : vector<1x32x128xbf16> to vector<32x128xbf16>
    %cst_55 = arith.constant dense<0.000000e+00> : vector<16x128xf32>
    %136 = tpu.matmul %133, %135, %cst_55 {dimension_numbers = #tpu.dot_dimension_numbers<[1], [0], [0], [1], [0, 0, 1, 1], [], []>} : vector<16x32xbf16>, vector<32x128xbf16>, vector<16x128xf32> -> vector<16x128xf32>
    %c0_56 = arith.constant 0 : index
    %c0_57 = arith.constant 0 : index
    %c0_58 = arith.constant 0 : index
    %137 = vector.load %arg12[%c0_56, %c0_57, %c0_58] : memref<1x1x128xf32, #tpu.memory_space<vmem>>, vector<1x1x128xf32>
    %138 = vector.shape_cast %137 : vector<1x1x128xf32> to vector<1x128xf32>
    %139 = vector.broadcast %138 : vector<1x128xf32> to vector<16x128xf32>
    %140 = arith.addf %136, %139 : vector<16x128xf32>
    %cst_59 = arith.constant 5.000000e-01 : f32
    %141 = vector.broadcast %cst_59 : f32 to vector<16x128xf32>
    %142 = arith.mulf %141, %140 : vector<16x128xf32>
    %cst_60 = arith.constant 4.471500e-02 : f32
    %143 = vector.broadcast %cst_60 : f32 to vector<16x128xf32>
    %144 = arith.mulf %143, %140 : vector<16x128xf32>
    %145 = arith.mulf %144, %140 : vector<16x128xf32>
    %146 = arith.mulf %145, %140 : vector<16x128xf32>
    %147 = arith.addf %140, %146 : vector<16x128xf32>
    %cst_61 = arith.constant 0.797884583 : f32
    %148 = vector.broadcast %cst_61 : f32 to vector<16x128xf32>
    %149 = arith.mulf %148, %147 : vector<16x128xf32>
    %150 = math.tanh %149 : vector<16x128xf32>
    %cst_62 = arith.constant 1.000000e+00 : f32
    %151 = vector.broadcast %cst_62 : f32 to vector<16x128xf32>
    %152 = arith.addf %151, %150 : vector<16x128xf32>
    %153 = arith.mulf %142, %152 : vector<16x128xf32>
    %154 = arith.truncf %153 : vector<16x128xf32> to vector<16x128xbf16>
    %c0_63 = arith.constant 0 : index
    %c0_64 = arith.constant 0 : index
    %c0_65 = arith.constant 0 : index
    %155 = vector.load %arg13[%c0_63, %c0_64, %c0_65] : memref<1x128x32xbf16, #tpu.memory_space<vmem>>, vector<1x128x32xbf16>
    %156 = vector.shape_cast %155 : vector<1x128x32xbf16> to vector<128x32xbf16>
    %cst_66 = arith.constant dense<0.000000e+00> : vector<16x32xf32>
    %157 = tpu.matmul %154, %156, %cst_66 {dimension_numbers = #tpu.dot_dimension_numbers<[1], [0], [0], [1], [0, 0, 1, 1], [], []>} : vector<16x128xbf16>, vector<128x32xbf16>, vector<16x32xf32> -> vector<16x32xf32>
    %c0_67 = arith.constant 0 : index
    %c0_68 = arith.constant 0 : index
    %c0_69 = arith.constant 0 : index
    %158 = vector.load %arg14[%c0_67, %c0_68, %c0_69] : memref<1x1x32xf32, #tpu.memory_space<vmem>>, vector<1x1x32xf32>
    %159 = vector.shape_cast %158 : vector<1x1x32xf32> to vector<1x32xf32>
    %160 = vector.broadcast %159 : vector<1x32xf32> to vector<16x32xf32>
    %161 = arith.addf %157, %160 : vector<16x32xf32>
    %162 = arith.addf %106, %161 : vector<16x32xf32>
    %c0_70 = arith.constant 0 : index
    %c0_71 = arith.constant 0 : index
    %163 = vector.load %arg20[%c0_70, %c0_71] : memref<16x32xf32, #tpu.memory_space<vmem>>, vector<16x32xf32>
    tpu.vector_store %arg20[%c0_70, %c0_71], %162 {strides = array<i32>} : memref<16x32xf32, #tpu.memory_space<vmem>>, vector<16x32xf32>,
    %c1_i32 = arith.constant 1 : i32
    %164 = arith.cmpi eq, %arg0, %c1_i32 : i32
    %165 = arith.extui %164 : i1 to i32
    %c0_i32_72 = arith.constant 0 : i32
    %166 = arith.cmpi ne, %165, %c0_i32_72 : i32
    scf.if %166 {
      %c0_73 = arith.constant 0 : index
      %c0_74 = arith.constant 0 : index
      %167 = vector.load %arg15[%c0_73, %c0_74] : memref<1x32xf32, #tpu.memory_space<vmem>>, vector<1x32xf32>
      %c0_75 = arith.constant 0 : index
      %c0_76 = arith.constant 0 : index
      %168 = vector.load %arg16[%c0_75, %c0_76] : memref<1x32xf32, #tpu.memory_space<vmem>>, vector<1x32xf32>
      %cst_77 = arith.constant dense<0.000000e+00> : vector<16xf32>
      %169 = vector.multi_reduction <add>, %162, %cst_77 [1] : vector<16x32xf32> to vector<16xf32>
      %170 = vector.shape_cast %169 : vector<16xf32> to vector<16x1xf32>
      %cst_78 = arith.constant 3.200000e+01 : f32
      %171 = vector.broadcast %cst_78 : f32 to vector<16x1xf32>
      %172 = arith.divf %170, %171 : vector<16x1xf32>
      %173 = vector.broadcast %172 : vector<16x1xf32> to vector<16x32xf32>
      %174 = arith.subf %162, %173 : vector<16x32xf32>
      %175 = arith.mulf %174, %174 : vector<16x32xf32>
      %cst_79 = arith.constant dense<0.000000e+00> : vector<16xf32>
      %176 = vector.multi_reduction <add>, %175, %cst_79 [1] : vector<16x32xf32> to vector<16xf32>
      %177 = vector.shape_cast %176 : vector<16xf32> to vector<16x1xf32>
      %cst_80 = arith.constant 3.200000e+01 : f32
      %178 = vector.broadcast %cst_80 : f32 to vector<16x1xf32>
      %179 = arith.divf %177, %178 : vector<16x1xf32>
      %180 = vector.broadcast %172 : vector<16x1xf32> to vector<16x32xf32>
      %181 = arith.subf %162, %180 : vector<16x32xf32>
      %cst_81 = arith.constant 9.99999974E-6 : f32
      %182 = vector.broadcast %cst_81 : f32 to vector<16x1xf32>
      %183 = arith.addf %179, %182 : vector<16x1xf32>
      %184 = math.rsqrt %183 : vector<16x1xf32>
      %185 = vector.broadcast %184 : vector<16x1xf32> to vector<16x32xf32>
      %186 = arith.mulf %181, %185 : vector<16x32xf32>
      %187 = vector.broadcast %167 : vector<1x32xf32> to vector<16x32xf32>
      %188 = arith.mulf %186, %187 : vector<16x32xf32>
      %189 = vector.broadcast %168 : vector<1x32xf32> to vector<16x32xf32>
      %190 = arith.addf %188, %189 : vector<16x32xf32>
      %191 = vector.extract_strided_slice %190 {offsets = [0, 0], sizes = [8, 32], strides = [1, 1]} : vector<16x32xf32> to vector<8x32xf32>
      %cst_82 = arith.constant dense<0.000000e+00> : vector<32xf32>
      %192 = vector.multi_reduction <add>, %191, %cst_82 [0] : vector<8x32xf32> to vector<32xf32>
      %193 = vector.shape_cast %192 : vector<32xf32> to vector<1x32xf32>
      %194 = vector.extract_strided_slice %190 {offsets = [8, 0], sizes = [8, 32], strides = [1, 1]} : vector<16x32xf32> to vector<8x32xf32>
      %cst_83 = arith.constant dense<0.000000e+00> : vector<32xf32>
      %195 = vector.multi_reduction <add>, %194, %cst_83 [0] : vector<8x32xf32> to vector<32xf32>
      %196 = vector.shape_cast %195 : vector<32xf32> to vector<1x32xf32>
      %197 = tpu.concatenate %193, %196 in 0 : vector<1x32xf32>, vector<1x32xf32> -> vector<2x32xf32>
      %cst_84 = arith.constant 1.250000e-01 : f32
      %198 = vector.broadcast %cst_84 : f32 to vector<2x32xf32>
      %199 = arith.mulf %197, %198 : vector<2x32xf32>
      %200 = arith.truncf %199 : vector<2x32xf32> to vector<2x32xbf16>
      %c0_85 = arith.constant 0 : index
      %c0_86 = arith.constant 0 : index
      %201 = vector.load %arg17[%c0_85, %c0_86] : memref<32x128xbf16, #tpu.memory_space<vmem>>, vector<32x128xbf16>
      %cst_87 = arith.constant dense<0.000000e+00> : vector<2x128xf32>
      %202 = tpu.matmul %200, %201, %cst_87 {dimension_numbers = #tpu.dot_dimension_numbers<[1], [0], [0], [1], [0, 0, 1, 1], [], []>} : vector<2x32xbf16>, vector<32x128xbf16>, vector<2x128xf32> -> vector<2x128xf32>
      %c0_88 = arith.constant 0 : index
      %c0_89 = arith.constant 0 : index
      %203 = vector.load %arg18[%c0_88, %c0_89] : memref<1x128xf32, #tpu.memory_space<vmem>>, vector<1x128xf32>
      %204 = vector.broadcast %203 : vector<1x128xf32> to vector<2x128xf32>
      %205 = arith.addf %202, %204 : vector<2x128xf32>
      %c0_90 = arith.constant 0 : index
      %c0_91 = arith.constant 0 : index
      %206 = vector.load %arg19[%c0_90, %c0_91] : memref<2x128xf32, #tpu.memory_space<vmem>>, vector<2x128xf32>
      tpu.vector_store %arg19[%c0_90, %c0_91], %205 {strides = array<i32>} : memref<2x128xf32, #tpu.memory_space<vmem>>, vector<2x128xf32>,
    } else {
    }
    return
  }
  func.func @transform_0(%arg0: i32) -> (i32, i32) {
    %c0_i32 = arith.constant 0 : i32
    %c0_i32_0 = arith.constant 0 : i32
    %c0_i32_1 = arith.constant 0 : i32
    return %c0_i32, %c0_i32_0 : i32, i32
  }
  func.func @transform_1(%arg0: i32) -> (i32, i32) {
    %c0_i32 = arith.constant 0 : i32
    %c0_i32_0 = arith.constant 0 : i32
    %c0_i32_1 = arith.constant 0 : i32
    return %c0_i32, %c0_i32_0 : i32, i32
  }
  func.func @transform_2(%arg0: i32) -> (i32, i32, i32) {
    %c0_i32 = arith.constant 0 : i32
    %c0_i32_0 = arith.constant 0 : i32
    %c0_i32_1 = arith.constant 0 : i32
    return %arg0, %c0_i32, %c0_i32_0 : i32, i32, i32
  }
  func.func @transform_3(%arg0: i32) -> (i32, i32, i32) {
    %c0_i32 = arith.constant 0 : i32
    %c0_i32_0 = arith.constant 0 : i32
    %c0_i32_1 = arith.constant 0 : i32
    return %arg0, %c0_i32, %c0_i32_0 : i32, i32, i32
  }
  func.func @transform_4(%arg0: i32) -> (i32, i32, i32) {
    %c0_i32 = arith.constant 0 : i32
    %c0_i32_0 = arith.constant 0 : i32
    %c0_i32_1 = arith.constant 0 : i32
    return %arg0, %c0_i32, %c0_i32_0 : i32, i32, i32
  }
  func.func @transform_5(%arg0: i32) -> (i32, i32, i32) {
    %c0_i32 = arith.constant 0 : i32
    %c0_i32_0 = arith.constant 0 : i32
    %c0_i32_1 = arith.constant 0 : i32
    return %arg0, %c0_i32, %c0_i32_0 : i32, i32, i32
  }
  func.func @transform_6(%arg0: i32) -> (i32, i32, i32) {
    %c0_i32 = arith.constant 0 : i32
    %c0_i32_0 = arith.constant 0 : i32
    %c0_i32_1 = arith.constant 0 : i32
    return %arg0, %c0_i32, %c0_i32_0 : i32, i32, i32
  }
  func.func @transform_7(%arg0: i32) -> (i32, i32, i32) {
    %c0_i32 = arith.constant 0 : i32
    %c0_i32_0 = arith.constant 0 : i32
    %c0_i32_1 = arith.constant 0 : i32
    return %arg0, %c0_i32, %c0_i32_0 : i32, i32, i32
  }
  func.func @transform_8(%arg0: i32) -> (i32, i32, i32) {
    %c0_i32 = arith.constant 0 : i32
    %c0_i32_0 = arith.constant 0 : i32
    %c0_i32_1 = arith.constant 0 : i32
    return %arg0, %c0_i32, %c0_i32_0 : i32, i32, i32
  }
  func.func @transform_9(%arg0: i32) -> (i32, i32, i32) {
    %c0_i32 = arith.constant 0 : i32
    %c0_i32_0 = arith.constant 0 : i32
    %c0_i32_1 = arith.constant 0 : i32
    return %arg0, %c0_i32, %c0_i32_0 : i32, i32, i32
  }
  func.func @transform_10(%arg0: i32) -> (i32, i32, i32) {
    %c0_i32 = arith.constant 0 : i32
    %c0_i32_0 = arith.constant 0 : i32
    %c0_i32_1 = arith.constant 0 : i32
    return %arg0, %c0_i32, %c0_i32_0 : i32, i32, i32
  }
  func.func @transform_11(%arg0: i32) -> (i32, i32, i32) {
    %c0_i32 = arith.constant 0 : i32
    %c0_i32_0 = arith.constant 0 : i32
    %c0_i32_1 = arith.constant 0 : i32
    return %arg0, %c0_i32, %c0_i32_0 : i32, i32, i32
  }
  func.func @transform_12(%arg0: i32) -> (i32, i32, i32) {
    %c0_i32 = arith.constant 0 : i32
    %c0_i32_0 = arith.constant 0 : i32
    %c0_i32_1 = arith.constant 0 : i32
    return %arg0, %c0_i32, %c0_i32_0 : i32, i32, i32
  }
  func.func @transform_13(%arg0: i32) -> (i32, i32, i32) {
    %c0_i32 = arith.constant 0 : i32
    %c0_i32_0 = arith.constant 0 : i32
    %c0_i32_1 = arith.constant 0 : i32
    return %arg0, %c0_i32, %c0_i32_0 : i32, i32, i32
  }
  func.func @transform_14(%arg0: i32) -> (i32, i32) {
    %c0_i32 = arith.constant 0 : i32
    %c0_i32_0 = arith.constant 0 : i32
    %c0_i32_1 = arith.constant 0 : i32
    return %c0_i32, %c0_i32_0 : i32, i32
  }
  func.func @transform_15(%arg0: i32) -> (i32, i32) {
    %c0_i32 = arith.constant 0 : i32
    %c0_i32_0 = arith.constant 0 : i32
    %c0_i32_1 = arith.constant 0 : i32
    return %c0_i32, %c0_i32_0 : i32, i32
  }
  func.func @transform_16(%arg0: i32) -> (i32, i32) {
    %c0_i32 = arith.constant 0 : i32
    %c0_i32_0 = arith.constant 0 : i32
    %c0_i32_1 = arith.constant 0 : i32
    return %c0_i32, %c0_i32_0 : i32, i32
  }
  func.func @transform_17(%arg0: i32) -> (i32, i32) {
    %c0_i32 = arith.constant 0 : i32
    %c0_i32_0 = arith.constant 0 : i32
    %c0_i32_1 = arith.constant 0 : i32
    return %c0_i32, %c0_i32_0 : i32, i32
  }
  func.func @transform_18(%arg0: i32) -> (i32, i32) {
    %c0_i32 = arith.constant 0 : i32
    %c0_i32_0 = arith.constant 0 : i32
    %c0_i32_1 = arith.constant 0 : i32
    return %c0_i32, %c0_i32_0 : i32, i32
  }
}

</mosaic_0001>

<bundles_post_ra>
// kernel: tpu_custom_call.1
= control target key start
LH: loop header
LB: loop body
LE: loop exit
PB: predicated region body
PF: predicated region fallthrough
CT: control target
= control target key end

     0   :  { %s2218_s0 = inlined_call_operand.vmem [shape: f32[16,32], index: 0, kind: input, shape index: {}]   ;;  %s2219_s1 = inlined_call_operand.vmem [shape: f32[2,8], index: 1, kind: input, shape index: {}]   ;;  %s2220_s2 = inlined_call_operand.vmem [shape: f32[2,1,32], index: 2, kind: input, shape index: {}]   ;;  %s2221_s3 = inlined_call_operand.vmem [shape: f32[2,1,32], index: 3, kind: input, shape index: {}]   ;;  %s2222_s4 = inlined_call_operand.vmem [shape: bf16[2,32,96], index: 4, kind: input, shape index: {}]   ;;  %s2223_s5 = inlined_call_operand.vmem [shape: f32[2,1,96], index: 5, kind: input, shape index: {}]   ;;  %s2224_s6 = inlined_call_operand.vmem [shape: bf16[2,32,32], index: 6, kind: input, shape index: {}]   ;;  %s2225_s7 = inlined_call_operand.vmem [shape: f32[2,1,32], index: 7, kind: input, shape index: {}]   ;;  %s2226_s8 = inlined_call_operand.vmem [shape: f32[2,1,32], index: 8, kind: input, shape index: {}]   ;;  %s2227_s9 = inlined_call_operand.vmem [shape: f32[2,1,32], index: 9, kind: input, shape index: {}]   ;;  %s2228_s10 = inlined_call_operand.vmem [shape: bf16[2,32,128], index: 10, kind: input, shape index: {}]   ;;  %s2229_s11 = inlined_call_operand.vmem [shape: f32[2,1,128], index: 11, kind: input, shape index: {}]   ;;  %s2230_s12 = inlined_call_operand.vmem [shape: bf16[2,128,32], index: 12, kind: input, shape index: {}]   ;;  %s2231_s13 = inlined_call_operand.vmem [shape: f32[2,1,32], index: 13, kind: input, shape index: {}]   ;;  %s2232_s14 = inlined_call_operand.vmem [shape: f32[1,32], index: 14, kind: input, shape index: {}]   ;;  %s2233_s15 = inlined_call_operand.vmem [shape: f32[1,32], index: 15, kind: input, shape index: {}]   ;;  %s2234_s16 = inlined_call_operand.vmem [shape: bf16[32,128], index: 16, kind: input, shape index: {}]   ;;  %s2235_s17 = inlined_call_operand.vmem [shape: f32[1,128], index: 17, kind: input, shape index: {}]   ;;  %s2236_s18 = inlined_call_operand.hbm [shape: f32[2,128], index: 18, kind: output, shape index: {}]  }
   0x1   :  { %2239 = sst [smem:[#allocation7_spill]] %s2218_s0 }
   0x2   :  { %2240 = sst [smem:[#allocation8_spill]] %s2219_s1 }
   0x3   :  { %2241 = sst [smem:[#allocation9_spill]] %s2220_s2 }
   0x4   :  { %2242 = sst [smem:[#allocation10_spill]] %s2222_s4 }
   0x5   :  { %2243 = sst [smem:[#allocation11_spill]] %s2224_s6 }
   0x6   :  { %2244 = sst [smem:[#allocation12_spill]] %s2232_s14 }
   0x7   :  { %2245 = sst [smem:[#allocation13_spill]] %s2233_s15 }
   0x8   :  { %2246 = sst [smem:[#allocation14_spill]] %s2235_s17 }
   0x9   :  { %2247 = sst [smem:[#allocation15_spill]] %s2236_s18 }
   0xa   :  { %23 = vsyncpa [#allocation4], 0  ;;  %s1959_s27 = smov 0  }
   0xb LB: > { %2248 = sst [smem:[#allocation6_spill]] %s1853_s27  ;;  %s1965_s28 = sadd.s32 4294967295, %s1853_s27   ;;  %s1853_s27 = sphi %s1959_s27, %s29_s27  }
   0xc   : > { %p1631_p0 = scmp.ge.s32.totalorder %s1853_s27, 1  ;;  %p602_p1 = scmp.lt.s32.totalorder %s1853_s27, 3 }
   0xe   : > { %p603_p2 = pnand %p1631_p0, %p602_p1 }
   0xf   : > { %p690_p3 = scmp.lt.s32.totalorder (!%p603_p2), %s1965_s28, 1  ;;  %s2250_s4 = sld [smem:[#allocation10_spill]] (!%p603_p2) }
  0x10   : > { %606 = sbr.rel (%p603_p2) target bundleno = 2408 (0x968), region = 92  ;;  %s2251_s6 = sld [smem:[#allocation11_spill]] (!%p603_p2) }
  0x11   : > { %p1640_p4 = scmp.ne.s32.totalorder (!%p603_p2), %s1965_s28, 0 }
  0x15   : > { %s1971_s29 = scalar_select %p690_p3, %s1965_s28, 1 }
  0x16   : > { %s2252_s26 = sld [smem:[#allocation7_spill]] (!%p1640_p4) }
  0x17   : > { %s1722_s2 = sshll.u32 %s1971_s29, 4  ;;  %s714_s15 = scalar_lea.vmem %s2226_s8, %s1971_s29 }
  0x18   : > { %s1989_s0 = scalar_lea.vmem %s2250_s4, %s1722_s2  ;;  %s1994_s17 = scalar_lea.vmem %s2251_s6, %s1722_s2 }
  0x19   : > { %s717_s25 = scalar_lea.vmem %s2227_s9, %s1971_s29  ;;  %s2011_s4 = scalar_lea.vmem %s2228_s10, %s1722_s2 }
  0x1a   : > { %s725_s6 = scalar_lea.vmem %s2229_s11, %s1971_s29  ;;  %s1725_s14 = sshll.u32 %s1971_s29, 6 }
  0x1b   : > { %s2021_s20 = scalar_lea.vmem %s2230_s12, %s1725_s14  ;;  %s733_s23 = scalar_lea.vmem %s2231_s13, %s1971_s29 }
  0x1c   : > { %738 = sbr.rel (%p1640_p4) target bundleno = 36 (0x24), region = 96 }
  0x21   : > { %v739_v0 = vld [vmem:[%s2252_s26] sm:$0xff]  ;;  %vm741_vm0 = vcmask 261120   ;;  %v740_v1 = vld [vmem:[%s2252_s26 + $0x8] sm:$0xff] }
  0x22   : > { %742 = vst.msk [vmem:[#allocation2] sm:$0xff] %vm741_vm0, %v739_v0 }
  0x23   : > { %743 = vst.msk [vmem:[#allocation2 + $0x8] sm:$0xff] %vm741_vm0, %v740_v1 }
  0x24 PF: > { %vm769_vm1 = vcmask 261120   ;;  %v1855_v6 = vmov 32.0   ;;  %v1727_v23 = vld [vmem:[%s1989_s0 + $0x8] sm:$0xff]  ;;  %v1726_v25 = vld [vmem:[%s1989_s0] sm:$0xff]  ;;  %s2253_s27 = sld [smem:[#allocation9_spill]]  ;;  %s2255_s21 = scalar_lea.vmem %s2221_s3, %s1971_s29  ;;  %vm876_vm9 = vcmask 130048  }
  0x25   : > { %1778 = vrcp.f32 %v1855_v6  ;;  %861 = vmatpush.bf16.msra.mxu0 %v1727_v23  ;;  %v1771_v49 = vld [vmem:[%s2255_s21] ss:$0 sm:$0xff]  ;;  %s2256_s30 = scalar_lea.vmem %s2223_s5, %s1971_s29  ;;  %s1856_s18 = smov 112   ;;  %vm924_vm14 = vcmask 64512  }
  0x26   : > { %v1772_v54 = vld [vmem:[%s2256_s30] ss:$0 sm:$0xff]  ;;  %s1857_s14 = smov 80   ;;  %s1858_s0 = smov 96  }
  0x27   : > { %s2257_s19 = sld [smem:[#allocation8_spill]]  ;;  %s1860_s22 = smov 64  }
  0x28   : > { %s1861_s21 = smov 48   ;;  %s1862_s24 = smov 16  }
  0x29   : > { %v2034_v2 = vld [vmem:[#allocation2] sm:$0xff]  ;;  %862 = vmatpush.bf16.msra.mxu0 %v1726_v25  ;;  %p1708_p5 = scmp.ne.s32.totalorder %s1965_s28, 1 }
  0x2a   : > { %v770_v3 = vsel %vm769_vm1, %v2034_v2, 0.0  ;;  %v2038_v4 = vld [vmem:[#allocation2 + $0x8] sm:$0xff]  ;;  %s2254_s1 = scalar_lea.vmem %s2253_s27, %s1971_s29  ;;  %s2262_s30 = sld [smem:[#allocation13_spill]] (!%p1708_p5) }
  0x2b   : > { %771 = vadd.xlane.f32.xlu0 %v770_v3  ;;  %v773_v5 = vsel %vm769_vm1, %v2038_v4, 0.0  ;;  %v1779_v7 = vpop.eup %1778  ;;  %v1770_v44 = vld [vmem:[%s2254_s1] ss:$0 sm:$0xff] }
  0x2c   : > { %v777_v8 = vmul.f32 32.0, %v1779_v7  ;;  %vm781_vm2 = vweird.f32 %v1779_v7 }
  0x2e   : > { %v778_v9 = vsub.f32 1.0, %v777_v8 }
  0x30   : > { %v779_v10 = vmul.f32 %v1779_v7, %v778_v9 }
  0x32   : > { %v780_v11 = vadd.f32 %v1779_v7, %v779_v10 }
  0x33   : > { %774 = vadd.xlane.f32.xlu0 %v773_v5 }
  0x34   : > { %v2042_v12 = vsel %vm781_vm2, %v1779_v7, %v780_v11 }
  0x9e   : > { %v772_v13 = vpop.xlane.xlu0 %771 }
  0x9f   : > { %v783_v14 = vmul.f32 %v2042_v12, %v772_v13 }
  0xa1   : > { %v785_v15 = vsub.f32 %v2034_v2, %v783_v14  ;;  %v751_v14 = vld [vmem:[%s2257_s19] sm:$0x3] }
  0xa2   : > { %vm755_vm10 = vcmp.gt.f32.partialorder %v751_v14, 0.5 }
  0xa3   : > { %v787_v16 = vmul.f32 %v785_v15, %v785_v15 }
  0xa5   : > { %v789_v17 = vsel %vm769_vm1, %v787_v16, 0.0  ;;  %v1859_v16 = vmov 0  }
  0xa6   : > { %790 = vadd.xlane.f32.xlu1 %v789_v17  ;;  %v775_v18 = vpop.xlane.xlu0 %774  ;;  %v759_v17 = vsel %vm755_vm10, 1, %v1859_v16 }
  0xa7   : > { %v784_v19 = vmul.f32 %v2042_v12, %v775_v18 }
  0xa9   : > { %v786_v20 = vsub.f32 %v2038_v4, %v784_v19 }
  0xab   : > { %v788_v21 = vmul.f32 %v786_v20, %v786_v20 }
  0xad   : > { %v792_v22 = vsel %vm769_vm1, %v788_v21, 0.0  ;;  %v753_v21 = vrot.slane %v751_v14, 1 }
  0xae   : > { %793 = vadd.xlane.f32.xlu1 %v792_v22 }
  0xaf   : > { %vm756_vm15 = vcmp.gt.f32.partialorder %v753_v21, 0.5 }
 0x119   : > { %v791_v24 = vpop.xlane.xlu1 %790 }
 0x11a   : > { %v795_v26 = vmul.f32 %v791_v24, %v2042_v12 }
 0x11c   : > { %v797_v27 = vadd.f32 1e-05, %v795_v26 }
 0x11e   : > { %1780 = vrsqrt.f32 %v797_v27  ;;  %vm805_vm4 = vweird.f32 %v797_v27 }
 0x121   : > { %v794_v28 = vpop.xlane.xlu1 %793 }
 0x122   : > { %v796_v29 = vmul.f32 %v794_v28, %v2042_v12 }
 0x124   : > { %v1781_v30 = vpop.eup %1780  ;;  %v798_v31 = vadd.f32 1e-05, %v796_v29 }
 0x125   : > { %v800_v32 = vmul.f32 %v1781_v30, %v797_v27  ;;  %vm806_vm3 = vweird.f32 %v1781_v30  ;;  %v760_v27 = vsel %vm756_vm15, 1, %v1859_v16 }
 0x126   : > { %1782 = vrsqrt.f32 %v798_v31  ;;  %vm807_vm5 = vmor %vm805_vm4, %vm806_vm3  ;;  %vm815_vm7 = vweird.f32 %v798_v31  ;;  %v762_v28 = vperm.slane %v760_v27, 0  ;;  %vm954_vm3 = vcmask 1043456  }
 0x127   : > { %v801_v33 = vmul.f32 %v1781_v30, %v800_v32 }
 0x128   : > { %vm764_vm0 = vcmp.eq.s32.totalorder %v762_v28, 1 }
 0x129   : > { %v802_v34 = vmul.f32 0.5, %v801_v33 }
 0x12b   : > { %v803_v35 = vsub.f32 1.5, %v802_v34 }
 0x12c   : > { %v1783_v36 = vpop.eup %1782 }
 0x12d   : > { %v804_v37 = vmul.f32 %v1781_v30, %v803_v35  ;;  %v810_v38 = vmul.f32 %v1783_v36, %v798_v31  ;;  %vm816_vm6 = vweird.f32 %v1783_v36 }
 0x12e   : > { %vm817_vm8 = vmor %vm815_vm7, %vm816_vm6 }
 0x12f   : > { %v811_v39 = vmul.f32 %v1783_v36, %v810_v38  ;;  %v808_v40 = vsel %vm807_vm5, %v1781_v30, %v804_v37 }
 0x130   : > { %v819_v43 = vmul.f32 %v808_v40, %v785_v15  ;;  %v746_v15 = vlaneseq }
 0x131   : > { %v812_v41 = vmul.f32 0.5, %v811_v39 }
 0x132   : > { %v824_v48 = vmul.f32 %v1770_v44, %v819_v43  ;;  %v747_v18 = vshrl.u32 %v746_v15, 7  ;;  %v749_v19 = vand.u32 127, %v746_v15 }
 0x133   : > { %v813_v42 = vsub.f32 1.5, %v812_v41 }
 0x134   : > { %v829_v51 = vadd.f32 %v1771_v49, %v824_v48  ;;  %vm750_vm11 = vcmp.ge.s32.totalorder %v747_v18, %v749_v19 }
 0x135   : > { %v814_v45 = vmul.f32 %v1783_v36, %v813_v42  ;;  %vm766_vm2 = vmand %vm750_vm11, %vm764_vm0 }
 0x137   : > { %v818_v46 = vsel %vm817_vm8, %v1783_v36, %v814_v45 }
 0x138   : > { %v820_v47 = vmul.f32 %v818_v46, %v786_v20  ;;  %v761_v20 = vperm.slane %v759_v17, 0 }
 0x13a   : > { %v825_v50 = vmul.f32 %v1770_v44, %v820_v47  ;;  %vm763_vm12 = vcmp.eq.s32.totalorder %v761_v20, 1 }
 0x13b   : > { %vm2092_vm13 = vmand %vm750_vm11, %vm763_vm12 }
 0x13c   : > { %v830_v52 = vadd.f32 %v1771_v49, %v825_v50 }
 0x13e   : > { %v831_v53 = vpack.c.bf16 %v830_v52, %v829_v51 }
 0x140   : > { %1649 = vmatmul.msk.bf16.vlgmr.msra.gmra.mxu0 %vm769_vm1, %v831_v53 }
 0x1bd   : > { %v864_v55 = vpop.f32.mrf.mxu0 }
 0x1be   : > { %v865_v56 = vadd.f32 %v1772_v54, %v864_v55 }
 0x1c0   : > { %v869_v57 = vpack.c.bf16 %v865_v56, %v865_v56 }
 0x1c2   : > { %v872_v58 = vunpack.c.l.b16 %v869_v57 }
 0x1c4   : > { %v2070_v59 = vpack.c.b16 %v872_v58, %v872_v58 }
 0x1c5   : > { %v866_v60 = vpop.f32.mrf.mxu0 }
 0x1c6   : > { %v867_v61 = vadd.f32 %v1772_v54, %v866_v60  ;;  %992 = vrot.lane.b32.xlu1 %v2070_v59, %s1856_s18  ;;  %994 = vrot.lane.b32.xlu0 %v2070_v59, %s1857_s14 }
 0x1c7   : > { %874 = vrot.lane.b32.xlu2 %v2070_v59, %s1858_s0 }
 0x1c8   : > { %v870_v62 = vpack.c.bf16 %v867_v61, %v867_v61 }
 0x1ca   : > { %v897_v63 = vunpack.c.l.b16 %v870_v62 }
 0x1cc   : > { %v2075_v0 = vpack.c.b16 %v897_v63, %v897_v63 }
 0x1cf   : > { %899 = vrot.lane.b32.xlu2 %v2075_v0, %s1858_s0 }
 0x1d7   : > { %1017 = vrot.lane.b32.xlu2 %v2075_v0, %s1857_s14 }
 0x1df   : > { %1015 = vrot.lane.b32.xlu2 %v2075_v0, %s1856_s18  ;;  %s2260_s18 = scalar_lea.vmem %s2225_s7, %s1971_s29 }
 0x221   : > { %v875_v1 = vpop.permute.xlu2 %874 }
 0x222   : > { %v881_v3 = vsel %vm876_vm9, %v875_v1, 0 }
 0x223   : > { %890 = vmatpush.bf16.xpose.msra.mxu1 %v881_v3 }
 0x229   : > { %v900_v5 = vpop.permute.xlu2 %899 }
 0x22a   : > { %1650 = vmatmul.msk.bf16.vlgmr.msra.gmra.mxu1 %vm876_vm9, %v869_v57  ;;  %v905_v6 = vsel %vm876_vm9, %v900_v5, 0 }
 0x22b   : > { %914 = vmatpush.bf16.xpose.msra.mxu2 %v905_v6 }
 0x231   : > { %v1018_v7 = vpop.permute.xlu2 %1017 }
 0x232   : > { %1651 = vmatmul.msk.bf16.vlgmr.msra.gmra.mxu2 %vm876_vm9, %v870_v62  ;;  %v1023_v8 = vsel %vm876_vm9, %v1018_v7, 0 }
 0x233   : > { %1032 = vmatpush.bf16.xpose.msrb.mxu1 %v1023_v8 }
 0x238   : > { %v995_v9 = vpop.permute.xlu0 %994  ;;  %v993_v13 = vpop.permute.xlu1 %992 }
 0x239   : > { %v1016_v10 = vpop.permute.xlu2 %1015  ;;  %v1000_v11 = vsel %vm876_vm9, %v995_v9, 0 }
 0x23a   : > { %1655 = vmatmul.msk.bf16.vlgmr.msrb.gmra.mxu1 %vm876_vm9, %v1016_v10  ;;  %1009 = vmatpush.bf16.xpose.msrb.mxu0 %v1000_v11 }
 0x241   : > { %1654 = vmatmul.msk.bf16.vlgmr.msrb.gmra.mxu0 %vm876_vm9, %v993_v13 }
 0x2a7   : > { %v892_v22 = vpop.f32.mrf.mxu1 }
 0x2a8   : > { %v920_v24 = vmul.f32 0.25, %v892_v22 }
 0x2aa   : > { %v922_v25 = vsel %vm2092_vm13, %v920_v24, -1e+30 }
 0x2ab   : > { %v925_v26 = vsel %vm924_vm14, %v922_v25, -inf }
 0x2ac   : > { %926 = vmax.xlane.f32.xlu2 %v925_v26 }
 0x2af   : > { %v894_v29 = vpop.f32.mrf.mxu1 }
 0x2b5   : > { %v916_v30 = vpop.f32.mrf.mxu2 }
 0x2b6   : > { %v921_v31 = vmul.f32 0.25, %v916_v30 }
 0x2b7   : > { %v1034_v32 = vpop.f32.mrf.mxu1 }
 0x2b8   : > { %v1039_v33 = vmul.f32 0.25, %v1034_v32  ;;  %v923_v34 = vsel %vm766_vm2, %v921_v31, -1e+30  ;;  %v1729_v32 = vld [vmem:[%s1994_s17 + $0x8] sm:$0xff] }
 0x2b9   : > { %v928_v35 = vsel %vm924_vm14, %v923_v34, -inf  ;;  %1148 = vmatpush.bf16.msra.mxu0 %v1729_v32  ;;  %v1739_v32 = vld [vmem:[%s2021_s20 + $0x38] sm:$0xff] }
 0x2ba   : > { %929 = vmax.xlane.f32.xlu0 %v928_v35  ;;  %v1041_v36 = vsel %vm766_vm2, %v1039_v33, -1e+30  ;;  %1339 = vmatpush.bf16.msrb.mxu2 %v1739_v32 }
 0x2bb   : > { %v1045_v37 = vsel %vm924_vm14, %v1041_v36, -inf }
 0x2bc   : > { %1046 = vmax.xlane.f32.xlu2 %v1045_v37 }
 0x2bd   : > { %v918_v38 = vpop.f32.mrf.mxu2 }
 0x2be   : > { %v1011_v39 = vpop.f32.mrf.mxu0  ;;  %v1728_v38 = vld [vmem:[%s1994_s17] sm:$0xff]  ;;  %s2263_s17 = sld [smem:[#allocation14_spill]] (!%p1708_p5) }
 0x2bf   : > { %v1038_v40 = vmul.f32 0.25, %v1011_v39  ;;  %v1036_v41 = vpop.f32.mrf.mxu1  ;;  %1149 = vmatpush.bf16.msra.mxu0 %v1728_v38  ;;  %v1733_v38 = vld [vmem:[%s2021_s20 + $0x8] sm:$0xff] }
 0x2c1   : > { %v1040_v42 = vsel %vm2092_vm13, %v1038_v40, -1e+30 }
 0x2c2   : > { %v1042_v43 = vsel %vm924_vm14, %v1040_v42, -inf }
 0x2c3   : > { %1043 = vmax.xlane.f32.xlu1 %v1042_v43 }
 0x2c6   : > { %v1013_v44 = vpop.f32.mrf.mxu0 }
 0x2d4   : > { %949 = vrot.lane.b32.xlu2 %v2070_v59, %s1860_s22 }
 0x31f   : > { %v927_v45 = vpop.xlane.xlu2 %926 }
 0x320   : > { %v931_v46 = vsub.f32 %v922_v25, %v927_v45  ;;  %v1773_v45 = vld [vmem:[%s2260_s18] ss:$0 sm:$0xff] }
 0x322   : > { %v933_v47 = vmul.f32 1.442695, %v931_v46 }
 0x324   : > { %1784 = vpow2.f32 %v933_v47 }
 0x32a   : > { %v1785_v48 = vpop.eup %1784 }
 0x32b   : > { %v937_v49 = vsel %vm924_vm14, %v1785_v48, 0.0 }
 0x32c   : > { %938 = vadd.xlane.f32.xlu0 %v937_v49 }
 0x32d   : > { %v930_v53 = vpop.xlane.xlu0 %929 }
 0x32e   : > { %v932_v58 = vsub.f32 %v923_v34, %v930_v53 }
 0x32f   : > { %v1047_v50 = vpop.xlane.xlu2 %1046 }
 0x330   : > { %v1049_v51 = vsub.f32 %v1041_v36, %v1047_v50  ;;  %v935_v63 = vmul.f32 1.442695, %v932_v58 }
 0x332   : > { %v1052_v52 = vmul.f32 1.442695, %v1049_v51 }
 0x334   : > { %1786 = vpow2.f32 %v1052_v52 }
 0x336   : > { %v1044_v54 = vpop.xlane.xlu1 %1043 }
 0x337   : > { %v1048_v55 = vsub.f32 %v1040_v42, %v1044_v54  ;;  %v950_v56 = vpop.permute.xlu2 %949 }
 0x338   : > { %v956_v57 = vsel %vm954_vm3, %v950_v56, 0 }
 0x339   : > { %v1050_v60 = vmul.f32 1.442695, %v1048_v55  ;;  %965 = vmatpush.bf16.msra.mxu3 %v956_v57 }
 0x33a   : > { %v1787_v61 = vpop.eup %1786 }
 0x33b   : > { %1788 = vpow2.f32 %v1050_v60  ;;  %v1057_v62 = vsel %vm924_vm14, %v1787_v61, 0.0 }
 0x33c   : > { %1058 = vadd.xlane.f32.xlu2 %v1057_v62  ;;  %1790 = vpow2.f32 %v935_v63  ;;  %v1731_v63 = vld [vmem:[%s2011_s4 + $0x8] sm:$0xff] }
 0x33d   : > { %1244 = vmatpush.bf16.msra.mxu1 %v1731_v63 }
 0x340   : > { %971 = vrot.lane.b32.xlu0 %v2075_v0, %s1860_s22 }
 0x341   : > { %v1789_v1 = vpop.eup %1788 }
 0x342   : > { %v1054_v3 = vsel %vm924_vm14, %v1789_v1, 0.0  ;;  %v1791_v5 = vpop.eup %1790 }
 0x343   : > { %1055 = vadd.xlane.f32.xlu1 %v1054_v3  ;;  %v940_v6 = vsel %vm924_vm14, %v1791_v5, 0.0 }
 0x348   : > { %1087 = vrot.lane.b32.xlu0 %v2075_v0, %s1861_s21 }
 0x34b   : > { %941 = vadd.xlane.f32.xlu1 %v940_v6  ;;  %v1730_v6 = vld [vmem:[%s2011_s4] sm:$0xff] }
 0x34c   : > { %1245 = vmatpush.bf16.msra.mxu1 %v1730_v6 }
 0x364   : > { %1066 = vrot.lane.b32.xlu1 %v2070_v59, %s1861_s21  ;;  %s2261_s21 = sld [smem:[#allocation12_spill]] (!%p1708_p5) }
 0x39f   : > { %v939_v7 = vpop.xlane.xlu0 %938 }
 0x3a0   : > { %1792 = vrcp.f32 %v939_v7 }
 0x3a6   : > { %v1793_v8 = vpop.eup %1792 }
 0x3a7   : > { %v945_v9 = vmul.f32 %v1793_v8, %v1785_v48 }
 0x3a9   : > { %v947_v10 = vpack.c.bf16 %v945_v9, %v945_v9 }
 0x3ab   : > { %1652 = vmatmul.msk.bf16.vlgmr.msra.gmra.mxu3 %vm924_vm14, %v947_v10 }
 0x3af   : > { %v1059_v23 = vpop.xlane.xlu2 %1058 }
 0x3b2   : > { %v972_v11 = vpop.permute.xlu0 %971 }
 0x3b3   : > { %v977_v13 = vsel %vm954_vm3, %v972_v11, 0 }
 0x3b4   : > { %986 = vmatpush.bf16.msrb.mxu3 %v977_v13 }
 0x3b6   : > { %v1056_v14 = vpop.xlane.xlu1 %1055 }
 0x3ba   : > { %v1088_v19 = vpop.permute.xlu0 %1087 }
 0x3bb   : > { %v1093_v22 = vsel %vm954_vm3, %v1088_v19, 0 }
 0x3be   : > { %v942_v15 = vpop.xlane.xlu1 %941 }
 0x3bf   : > { %1794 = vrcp.f32 %v942_v15 }
 0x3c0   : > { %1796 = vrcp.f32 %v1056_v14 }
 0x3c1   : > { %1798 = vrcp.f32 %v1059_v23 }
 0x3c5   : > { %v1795_v0 = vpop.eup %1794 }
 0x3c6   : > { %v946_v16 = vmul.f32 %v1795_v0, %v1791_v5  ;;  %v1797_v59 = vpop.eup %1796 }
 0x3c7   : > { %v1062_v18 = vmul.f32 %v1797_v59, %v1789_v1  ;;  %v1799_v25 = vpop.eup %1798 }
 0x3c8   : > { %v948_v17 = vpack.c.bf16 %v946_v16, %v946_v16  ;;  %v1063_v26 = vmul.f32 %v1799_v25, %v1787_v61  ;;  %v1775_v25 = vld [vmem:[%s717_s25] ss:$0 sm:$0xff] }
 0x3c9   : > { %v1064_v24 = vpack.c.bf16 %v1062_v18, %v1062_v18 }
 0x3ca   : > { %1653 = vmatmul.msk.bf16.vlgmr.msrb.gmra.mxu3 %vm924_vm14, %v948_v17  ;;  %v1065_v27 = vpack.c.bf16 %v1063_v26, %v1063_v26 }
 0x3d6   : > { %v1067_v20 = vpop.permute.xlu1 %1066 }
 0x3d7   : > { %v1072_v21 = vsel %vm954_vm3, %v1067_v20, 0 }
 0x3d8   : > { %1081 = vmatpush.bf16.msra.mxu3 %v1072_v21  ;;  %v1774_v21 = vld [vmem:[%s714_s15] ss:$0 sm:$0xff] }
 0x3db   : > { %1656 = vmatmul.msk.bf16.vlgmr.msra.gmra.mxu3 %vm924_vm14, %v1064_v24 }
 0x3dc   : > { %1102 = vmatpush.bf16.msrb.mxu3 %v1093_v22 }
 0x3eb   : > { %1657 = vmatmul.msk.bf16.vlgmr.msrb.gmra.mxu3 %vm924_vm14, %v1065_v27 }
 0x42e   : > { %v967_v28 = vpop.f32.mrf.mxu3 }
 0x436   : > { %v969_v29 = vpop.f32.mrf.mxu3 }
 0x44d   : > { %v988_v30 = vpop.f32.mrf.mxu3 }
 0x455   : > { %v990_v31 = vpop.f32.mrf.mxu3 }
 0x45e   : > { %v1083_v33 = vpop.f32.mrf.mxu3 }
 0x466   : > { %v1085_v34 = vpop.f32.mrf.mxu3 }
 0x467   : > { %v1737_v34 = vld [vmem:[%s2021_s20 + $0x28] sm:$0xff] }
 0x46e   : > { %v1104_v35 = vpop.f32.mrf.mxu3 }
 0x46f   : > { %v1765_v36 = vpack.i.bf16 %v1104_v35, %v1083_v33  ;;  %v1738_v33 = vld [vmem:[%s2021_s20 + $0x30] sm:$0xff]  ;;  %v1736_v35 = vld [vmem:[%s2021_s20 + $0x20] sm:$0xff] }
 0x470   : > { %1340 = vmatpush.bf16.msrb.mxu2 %v1738_v33 }
 0x471   : > { %1766 = vrot.lane.b32.xlu0 %v1765_v36, %s1862_s24  ;;  %v1735_v36 = vld [vmem:[%s2021_s20 + $0x18] sm:$0xff] }
 0x474   : > { %1341 = vmatpush.bf16.msrb.mxu2 %v1737_v34 }
 0x476   : > { %v1106_v37 = vpop.f32.mrf.mxu3 }
 0x477   : > { %v1734_v37 = vld [vmem:[%s2021_s20 + $0x10] sm:$0xff] }
 0x478   : > { %1342 = vmatpush.bf16.msrb.mxu2 %v1736_v35 }
 0x47c   : > { %1343 = vmatpush.bf16.msrb.mxu2 %v1735_v36 }
 0x480   : > { %1344 = vmatpush.bf16.msrb.mxu2 %v1734_v37 }
 0x484   : > { %1345 = vmatpush.bf16.msrb.mxu2 %v1733_v38 }
 0x4e3   : > { %v1767_v39 = vpop.permute.xlu0 %1766 }
 0x4e4   : > { %v1769_v40 = vunpack.i.h.bf16 %v1767_v39  ;;  %v1768_v41 = vunpack.i.l.bf16 %v1767_v39  ;;  %v1732_v39 = vld [vmem:[%s2021_s20] sm:$0xff] }
 0x4e5   : > { %1346 = vmatpush.bf16.msrb.mxu2 %v1732_v39 }
 0x4e6   : > { %v1117_v42 = vsel %vm876_vm9, %v988_v30, %v1769_v40  ;;  %v1116_v43 = vsel %vm876_vm9, %v967_v28, %v1768_v41  ;;  %v1776_v40 = vld [vmem:[%s725_s6] ss:$0 sm:$0xff] }
 0x4e7   : > { %v1118_v44 = vpack.c.bf16 %v1117_v42, %v1116_v43 }
 0x4e9   : > { %1666 = vmatmul.msk.bf16.vlgmr.msra.gmra.mxu0 %vm769_vm1, %v1118_v44 }
 0x566   : > { %v1151_v46 = vpop.f32.mrf.mxu0 }
 0x567   : > { %v1152_v47 = vadd.f32 %v1773_v45, %v1151_v46 }
 0x569   : > { %v2132_v48 = vadd.f32 %v1152_v47, %v2034_v2 }
 0x56b   : > { %v1160_v49 = vsel %vm769_vm1, %v2132_v48, 0.0 }
 0x56c   : > { %1161 = vadd.xlane.f32.xlu0 %v1160_v49 }
 0x56e   : > { %v1153_v50 = vpop.f32.mrf.mxu0 }
 0x56f   : > { %v1154_v51 = vadd.f32 %v1773_v45, %v1153_v50 }
 0x571   : > { %v2137_v52 = vadd.f32 %v1154_v51, %v2038_v4 }
 0x573   : > { %v1163_v53 = vsel %vm769_vm1, %v2137_v52, 0.0 }
 0x574   : > { %1164 = vadd.xlane.f32.xlu1 %v1163_v53 }
 0x5df   : > { %v1162_v54 = vpop.xlane.xlu0 %1161 }
 0x5e0   : > { %v1166_v55 = vmul.f32 %v1162_v54, %v2042_v12 }
 0x5e2   : > { %v1168_v2 = vsub.f32 %v2132_v48, %v1166_v55 }
 0x5e4   : > { %v1170_v56 = vmul.f32 %v1168_v2, %v1168_v2 }
 0x5e6   : > { %v1172_v57 = vsel %vm769_vm1, %v1170_v56, 0.0 }
 0x5e7   : > { %v1165_v58 = vpop.xlane.xlu1 %1164  ;;  %1173 = vadd.xlane.f32.xlu2 %v1172_v57 }
 0x5e8   : > { %v1167_v60 = vmul.f32 %v1165_v58, %v2042_v12 }
 0x5ea   : > { %v1169_v4 = vsub.f32 %v2137_v52, %v1167_v60 }
 0x5ec   : > { %v1171_v61 = vmul.f32 %v1169_v4, %v1169_v4 }
 0x5ee   : > { %v1175_v62 = vsel %vm769_vm1, %v1171_v61, 0.0 }
 0x5ef   : > { %1176 = vadd.xlane.f32.xlu2 %v1175_v62 }
 0x65a   : > { %v1174_v1 = vpop.xlane.xlu2 %1173 }
 0x65b   : > { %v1178_v3 = vmul.f32 %v1174_v1, %v2042_v12 }
 0x65d   : > { %v1180_v5 = vadd.f32 1e-05, %v1178_v3  ;;  %v1777_v3 = vld [vmem:[%s733_s23] ss:$0 sm:$0xff] }
 0x65f   : > { %1800 = vrsqrt.f32 %v1180_v5  ;;  %vm1188_vm5 = vweird.f32 %v1180_v5 }
 0x662   : > { %v1177_v7 = vpop.xlane.xlu2 %1176 }
 0x663   : > { %v1179_v8 = vmul.f32 %v1177_v7, %v2042_v12 }
 0x665   : > { %v1801_v9 = vpop.eup %1800  ;;  %v1181_v10 = vadd.f32 1e-05, %v1179_v8 }
 0x666   : > { %v1183_v11 = vmul.f32 %v1801_v9, %v1180_v5  ;;  %vm1189_vm4 = vweird.f32 %v1801_v9 }
 0x667   : > { %1802 = vrsqrt.f32 %v1181_v10  ;;  %vm1190_vm6 = vmor %vm1188_vm5, %vm1189_vm4  ;;  %vm1198_vm8 = vweird.f32 %v1181_v10 }
 0x668   : > { %v1184_v13 = vmul.f32 %v1801_v9, %v1183_v11 }
 0x66a   : > { %v1185_v14 = vmul.f32 0.5, %v1184_v13 }
 0x66c   : > { %v1186_v15 = vsub.f32 1.5, %v1185_v14 }
 0x66d   : > { %v1803_v0 = vpop.eup %1802 }
 0x66e   : > { %v1187_v16 = vmul.f32 %v1801_v9, %v1186_v15  ;;  %v1193_v17 = vmul.f32 %v1803_v0, %v1181_v10  ;;  %vm1199_vm7 = vweird.f32 %v1803_v0 }
 0x66f   : > { %vm1200_vm9 = vmor %vm1198_vm8, %vm1199_vm7 }
 0x670   : > { %v1194_v59 = vmul.f32 %v1803_v0, %v1193_v17  ;;  %v1191_v18 = vsel %vm1190_vm6, %v1801_v9, %v1187_v16 }
 0x671   : > { %v1202_v22 = vmul.f32 %v1191_v18, %v1168_v2 }
 0x672   : > { %v1195_v19 = vmul.f32 0.5, %v1194_v59 }
 0x673   : > { %v1207_v26 = vmul.f32 %v1774_v21, %v1202_v22 }
 0x674   : > { %v1196_v20 = vsub.f32 1.5, %v1195_v19 }
 0x675   : > { %v1212_v29 = vadd.f32 %v1775_v25, %v1207_v26 }
 0x676   : > { %v1197_v23 = vmul.f32 %v1803_v0, %v1196_v20 }
 0x678   : > { %v1201_v24 = vsel %vm1200_vm9, %v1803_v0, %v1197_v23 }
 0x679   : > { %v1203_v27 = vmul.f32 %v1201_v24, %v1169_v4 }
 0x67b   : > { %v1208_v28 = vmul.f32 %v1774_v21, %v1203_v27 }
 0x67d   : > { %v1213_v30 = vadd.f32 %v1775_v25, %v1208_v28 }
 0x67f   : > { %v1214_v31 = vpack.c.bf16 %v1213_v30, %v1212_v29 }
 0x681   : > { %1675 = vmatmul.msk.bf16.vlgmr.msra.gmra.mxu1 %vm769_vm1, %v1214_v31 }
 0x6fe   : > { %v1247_v41 = vpop.f32.mrf.mxu1 }
 0x6ff   : > { %v1248_v42 = vadd.f32 %v1776_v40, %v1247_v41 }
 0x701   : > { %v1254_v43 = vmul.f32 0.044715, %v1248_v42  ;;  %v1252_v60 = vmul.f32 0.5, %v1248_v42 }
 0x703   : > { %v1256_v44 = vmul.f32 %v1254_v43, %v1248_v42 }
 0x705   : > { %v1258_v45 = vmul.f32 %v1256_v44, %v1248_v42 }
 0x706   : > { %v1249_v46 = vpop.f32.mrf.mxu1 }
 0x707   : > { %v1250_v47 = vadd.f32 %v1776_v40, %v1249_v46  ;;  %v1260_v49 = vadd.f32 %v1258_v45, %v1248_v42 }
 0x709   : > { %v1255_v50 = vmul.f32 0.044715, %v1250_v47  ;;  %v1262_v53 = vmul.f32 0.7978846, %v1260_v49  ;;  %v1253_v4 = vmul.f32 0.5, %v1250_v47 }
 0x70b   : > { %v1257_v51 = vmul.f32 %v1255_v50, %v1250_v47  ;;  %1804 = vtanh.f32 %v1262_v53 }
 0x70d   : > { %v1259_v54 = vmul.f32 %v1257_v51, %v1250_v47 }
 0x70f   : > { %v1261_v55 = vadd.f32 %v1259_v54, %v1250_v47 }
 0x711   : > { %v1263_v2 = vmul.f32 0.7978846, %v1261_v55  ;;  %v1805_v56 = vpop.eup %1804 }
 0x712   : > { %v1266_v57 = vadd.f32 1.0, %v1805_v56 }
 0x713   : > { %1806 = vtanh.f32 %v1263_v2 }
 0x714   : > { %v1268_v62 = vmul.f32 %v1266_v57, %v1252_v60 }
 0x719   : > { %v1807_v58 = vpop.eup %1806 }
 0x71a   : > { %v1267_v61 = vadd.f32 1.0, %v1807_v58 }
 0x71c   : > { %v1269_v63 = vmul.f32 %v1267_v61, %v1253_v4 }
 0x71e   : > { %v1270_v1 = vpack.c.bf16 %v1269_v63, %v1268_v62 }
 0x720   : > { %1347 = vmatmul.bf16.vlgmr.msrb.gmra.mxu2 %v1270_v1 }
 0x7a3   : > { %v1348_v5 = vpop.f32.mrf.mxu2 }
 0x7a4   : > { %v1349_v6 = vadd.f32 %v1777_v3, %v1348_v5 }
 0x7a6   : > { %v1353_v7 = vadd.f32 %v1349_v6, %v2132_v48 }
 0x7a8   : > { %1355 = vst.msk [vmem:[#allocation2] sm:$0xff] %vm769_vm1, %v1353_v7 }
 0x7ab   : > { %v1350_v8 = vpop.f32.mrf.mxu2 }
 0x7ac   : > { %v1351_v9 = vadd.f32 %v1777_v3, %v1350_v8  ;;  %1360 = sbr.rel (%p1708_p5) target bundleno = 2397 (0x95d), region = 100 }
 0x7ae   : > { %v1354_v10 = vadd.f32 %v1351_v9, %v2137_v52 }
 0x7b0   : > { %1356 = vst.msk [vmem:[#allocation2 + $0x8] sm:$0xff] %vm769_vm1, %v1354_v10 }
 0x7b1   : > { %v1363_v11 = vsel %vm769_vm1, %v1353_v7, 0.0  ;;  %v1366_v13 = vsel %vm769_vm1, %v1354_v10, 0.0  ;;  %v1741_v22 = vld [vmem:[%s2234_s16 + $0x8] sm:$0xff]  ;;  %v1740_v24 = vld [vmem:[%s2234_s16] sm:$0xff]  ;;  %vm1431_vm0 = vcmask 1040384  }
 0x7b2   : > { %1364 = vadd.xlane.f32.xlu0 %v1363_v11  ;;  %1464 = vmatpush.bf16.msra.mxu0 %v1741_v22  ;;  %v1808_v36 = vld [vmem:[%s2261_s21] ss:$0 sm:$0xff] }
 0x7b3   : > { %v1809_v39 = vld [vmem:[%s2262_s30] ss:$0 sm:$0xff] }
 0x7b4   : > { %v1810_v6 = vld [vmem:[%s2263_s17] ss:$0 sm:$0xff] }
 0x7b6   : > { %1465 = vmatpush.bf16.msra.mxu0 %v1740_v24 }
 0x7ba   : > { %1367 = vadd.xlane.f32.xlu0 %v1366_v13 }
 0x825   : > { %v1365_v14 = vpop.xlane.xlu0 %1364 }
 0x826   : > { %v1369_v48 = vmul.f32 %v1365_v14, %v2042_v12 }
 0x828   : > { %v1371_v15 = vsub.f32 %v1353_v7, %v1369_v48 }
 0x82a   : > { %v1373_v0 = vmul.f32 %v1371_v15, %v1371_v15 }
 0x82c   : > { %v1375_v16 = vsel %vm769_vm1, %v1373_v0, 0.0 }
 0x82d   : > { %1376 = vadd.xlane.f32.xlu1 %v1375_v16  ;;  %v1368_v52 = vpop.xlane.xlu0 %1367 }
 0x82e   : > { %v1370_v17 = vmul.f32 %v1368_v52, %v2042_v12 }
 0x830   : > { %v1372_v59 = vsub.f32 %v1354_v10, %v1370_v17 }
 0x832   : > { %v1374_v18 = vmul.f32 %v1372_v59, %v1372_v59 }
 0x834   : > { %v1378_v19 = vsel %vm769_vm1, %v1374_v18, 0.0 }
 0x835   : > { %1379 = vadd.xlane.f32.xlu1 %v1378_v19 }
 0x8a0   : > { %v1377_v20 = vpop.xlane.xlu1 %1376 }
 0x8a1   : > { %v1381_v21 = vmul.f32 %v1377_v20, %v2042_v12 }
 0x8a3   : > { %v1383_v23 = vadd.f32 1e-05, %v1381_v21 }
 0x8a5   : > { %1811 = vrsqrt.f32 %v1383_v23  ;;  %vm1391_vm11 = vweird.f32 %v1383_v23 }
 0x8a8   : > { %v1380_v25 = vpop.xlane.xlu1 %1379 }
 0x8a9   : > { %v1382_v26 = vmul.f32 %v1380_v25, %v2042_v12 }
 0x8ab   : > { %v1812_v27 = vpop.eup %1811  ;;  %v1384_v28 = vadd.f32 1e-05, %v1382_v26 }
 0x8ac   : > { %v1386_v29 = vmul.f32 %v1812_v27, %v1383_v23  ;;  %vm1392_vm10 = vweird.f32 %v1812_v27 }
 0x8ad   : > { %1813 = vrsqrt.f32 %v1384_v28  ;;  %vm1393_vm12 = vmor %vm1391_vm11, %vm1392_vm10  ;;  %vm1401_vm14 = vweird.f32 %v1384_v28 }
 0x8ae   : > { %v1387_v30 = vmul.f32 %v1812_v27, %v1386_v29 }
 0x8b0   : > { %v1388_v31 = vmul.f32 0.5, %v1387_v30 }
 0x8b2   : > { %v1389_v32 = vsub.f32 1.5, %v1388_v31 }
 0x8b3   : > { %v1814_v33 = vpop.eup %1813 }
 0x8b4   : > { %v1390_v34 = vmul.f32 %v1812_v27, %v1389_v32  ;;  %v1396_v35 = vmul.f32 %v1814_v33, %v1384_v28  ;;  %vm1402_vm13 = vweird.f32 %v1814_v33 }
 0x8b5   : > { %vm1403_vm15 = vmor %vm1401_vm14, %vm1402_vm13 }
 0x8b6   : > { %v1394_v37 = vsel %vm1393_vm12, %v1812_v27, %v1390_v34  ;;  %v1397_v38 = vmul.f32 %v1814_v33, %v1396_v35 }
 0x8b7   : > { %v1405_v12 = vmul.f32 %v1394_v37, %v1371_v15 }
 0x8b8   : > { %v1398_v40 = vmul.f32 0.5, %v1397_v38 }
 0x8b9   : > { %v1410_v41 = vmul.f32 %v1808_v36, %v1405_v12 }
 0x8ba   : > { %v1399_v42 = vsub.f32 1.5, %v1398_v40 }
 0x8bb   : > { %v1415_v43 = vadd.f32 %v1809_v39, %v1410_v41 }
 0x8bc   : > { %v1400_v44 = vmul.f32 %v1814_v33, %v1399_v42 }
 0x8bd   : > { %v1417_v45 = vsel %vm769_vm1, %v1415_v43, 0.0 }
 0x8be   : > { %v1404_v46 = vsel %vm1403_vm15, %v1814_v33, %v1400_v44  ;;  %v1418_v47 = vrot.slane %v1417_v45, 4 }
 0x8bf   : > { %v1406_v49 = vmul.f32 %v1404_v46, %v1372_v59 }
 0x8c0   : > { %v1419_v50 = vadd.f32 %v1418_v47, %v1417_v45 }
 0x8c1   : > { %v1411_v51 = vmul.f32 %v1808_v36, %v1406_v49 }
 0x8c2   : > { %v1420_v54 = vrot.slane %v1419_v50, 2 }
 0x8c3   : > { %v1416_v53 = vadd.f32 %v1809_v39, %v1411_v51 }
 0x8c4   : > { %v1421_v56 = vadd.f32 %v1420_v54, %v1419_v50 }
 0x8c5   : > { %v1424_v55 = vsel %vm769_vm1, %v1416_v53, 0.0 }
 0x8c6   : > { %v1425_v2 = vrot.slane %v1424_v55, 4  ;;  %v1422_v60 = vrot.slane %v1421_v56, 1 }
 0x8c8   : > { %v1426_v57 = vadd.f32 %v1425_v2, %v1424_v55  ;;  %v1423_v62 = vadd.f32 %v1422_v60, %v1421_v56 }
 0x8ca   : > { %v1427_v58 = vrot.slane %v1426_v57, 2 }
 0x8cc   : > { %v1428_v4 = vadd.f32 %v1427_v58, %v1426_v57 }
 0x8ce   : > { %v1429_v61 = vrot.slane %v1428_v4, 1 }
 0x8d0   : > { %v1430_v63 = vadd.f32 %v1429_v61, %v1428_v4 }
 0x8d2   : > { %v1432_v1 = vsel %vm1431_vm0, %v1423_v62, %v1430_v63 }
 0x8d3   : > { %v1433_v3 = vmul.f32 0.125, %v1432_v1 }
 0x8d5   : > { %v1434_v5 = vpack.c.bf16 %v1433_v3, %v1433_v3 }
 0x8d7   : > { %1717 = vmatmul.msk.bf16.vlgmr.msra.gmra.mxu0 %vm769_vm1, %v1434_v5 }
 0x954   : > { %v1467_v7 = vpop.f32.mrf.mxu0 }
 0x955   : > { %v1468_v8 = vadd.f32 %v1810_v6, %v1467_v7 }
 0x957   : > { %1471 = vst [vmem:[#allocation3] sm:$0x3] %v1468_v8 }
 0x95c   : > { %v1469_v9 = vpop.f32.mrf.mxu0 }
 0x95d PF: > { %p1746_p6 = scmp.eq.s32.totalorder %s1965_s28, 1  ;;  %s1863_s14 = smov [#allocation3]  }
 0x95e   : > { %s1478_s0 = sshll.u32 %s1863_s14, 4  ;;  %s2264_s6 = sld [smem:[#allocation15_spill]]  ;;  %s1479_s0 = int_to_ptr.vmem [resolvable:$true] %s1478_s0 }
 0x964   : > { %s1480_s20 = sshll.u32 %s2264_s6, 4  ;;  %s1481_s20 = int_to_ptr.hbm [resolvable:$true] %s1480_s20 }
 0x965   : > { %1743 = dma.vmem_to_hbm [thread:$0]  (%p1746_p6), %s1479_s0, 32, %s1481_s20, [#allocation4]  }
 0x966   : > { %1848 = dma.done.wait (%p1746_p6), [#allocation4], 32  }
 0x967   : > { %1850 = vsyncadd (%p1746_p6), [#allocation4], 4294967264 }
 0x968 PF: > { %s2265_s29 = sld [smem:[#allocation6_spill]] }
 0x96e   : > { %s29_s27 = sadd.s32 1, %s2265_s29  }
 0x96f   : > { %p26_p7 = scmp.ge.s32.totalorder %s29_s27, 4  }
 0x971   :  { %28 = sbr.rel (!%p26_p7) target bundleno = 11 (0xb), region = 160 }
 0x976   :  { %1494 = vsyncpa [#allocation4], 1 }
 0x977   :  { %1496 = vsyncpa [#allocation4 + $0x1], 1 }

</bundles_post_ra>
